<compile_context>
chip_gen: v6e
topology: v6e:2x2x1
jax: 0.10.0
libtpu: 0.0.40
codegen_flags: <defaults>
</compile_context>

<pallas_src>
import numpy as np
import jax
import jax.numpy as jnp
from jax.experimental import pallas as pl
from jax.experimental.pallas import tpu as pltpu


# ----------------------------------------------------------------------------
# Host-side construction of the fused preprocessing matrix.
# ----------------------------------------------------------------------------
def bilinear_matrix(out_size: int, in_size: int) -> np.ndarray:
    """Bilinear interpolation matrix (half-pixel centers): (out_size, in_size)."""
    out_idx = np.arange(out_size, dtype=np.float64)
    src = (out_idx + 0.5) * (in_size / out_size) - 0.5
    src = np.clip(src, 0.0, in_size - 1)
    lo = np.floor(src).astype(np.int64)
    hi = np.minimum(lo + 1, in_size - 1)
    w_hi = src - lo
    w_lo = 1.0 - w_hi
    m = np.zeros((out_size, in_size), dtype=np.float64)
    m[np.arange(out_size), lo] += w_lo
    m[np.arange(out_size), hi] += w_hi
    return m


def build_fused_matrix(h_in: int, w_in: int, h_out: int, w_out: int) -> np.ndarray:
    """Fuse Grayscale (ITU-R 601-2) + bilinear Resize + ToTensor(1/255) into one matrix.

    Returns M of shape (3*h_in*w_in, h_out*w_out) with
      out[ho*w_out + wo] = sum_{c,hi,wi} x[c*h_in*w_in + hi*w_in + wi] * M[row, col]
    """
    rh = bilinear_matrix(h_out, h_in)                      # (h_out, h_in)
    rw = bilinear_matrix(w_out, w_in)                      # (w_out, w_in)
    gray_w = np.array([0.299, 0.587, 0.114], dtype=np.float64)
    # M[(c, hi, wi), (ho, wo)] = (1/255) * gray_w[c] * rh[ho, hi] * rw[wo, wi]
    m = np.einsum("c,oh,pw->chwop", gray_w, rh, rw) / 255.0
    m = m.reshape(3 * h_in * w_in, h_out * w_out).astype(np.float32)
    return m


# ----------------------------------------------------------------------------
# Pallas kernel: one fused bf16 x bf16 matmul (f32 accumulate) per image block.
# ----------------------------------------------------------------------------
def preprocess_kernel(x_ref, m_ref, o_ref):
    # x_ref : (B, K)      raw pixels in [0, 255] (uint8 preferred; any dtype ok)
    # m_ref : (K, P_pad)  bf16 fused (gray * resize * 1/255) matrix
    # o_ref : (B, P_pad)  f32 output in [0, 1]
    x = x_ref[...].astype(jnp.bfloat16)      # widening cast uint8 -> bf16 (VPU)
    o_ref[...] = jnp.dot(x, m_ref[...], preferred_element_type=jnp.float32)


def _vmem_limit_bytes() -> int:
    """~75% of physical VMEM, capped at 100 MiB (96 MiB-ish on v5e/v6e, ~48 MiB on v7x)."""
    cap = 128 * 1024 * 1024
    try:
        info = pltpu.get_tpu_info()
        cap = int(getattr(info, "vmem_capacity_bytes", cap) or cap)
    except Exception:
        pass
    return int(min(0.75 * cap, 100 * 1024 * 1024))


def prepare_images(x, image_size: int, image_channel: int, block_b: int = 2048):
    """x: [N, 3, H_in, W_in] raw pixels in [0,255] (uint8 preferred) ->
    float32 [N, image_channel, image_size, image_size] in [0,1]."""
    n, c_in, h_in, w_in = x.shape
    assert c_in == 3
    k = 3 * h_in * w_in
    p = image_size * image_size
    p_pad = ((p + 127) // 128) * 128           # lane-dense, unmasked output stores

    m_np = build_fused_matrix(h_in, w_in, image_size, image_size)   # (k, p) f32
    if p_pad != p:
        m_np = np.pad(m_np, ((0, 0), (0, p_pad - p)))
    m = jnp.asarray(m_np, dtype=jnp.bfloat16)  # bf16 weights -> bf16 MXU path

    # No dtype cast / no jnp.pad here: both would add a full extra HBM pass.
    x_flat = x.reshape(n, k)

    # Block size: sublane-aligned for the input dtype (32 covers 8-bit tiling),
    # and >=2 grid steps when possible so "parallel" can shard across v7x's 2 TCs.
    itemsize = jnp.dtype(x.dtype).itemsize
    align = {1: 32, 2: 16}.get(itemsize, 8)
    if n <= 2 * align:
        b = n                                  # single block == full array dims
    else:
        b = min(block_b, max(align, ((n + 1) // 2) // align * align))
    grid = (pl.cdiv(n, b),)                    # ragged last block handled by Pallas

    vmem_limit = _vmem_limit_bytes()

    def _call(single_buffer_m: bool):
        if single_buffer_m:
            # Constant index_map -> one resident copy of M is enough.
            m_spec = pl.BlockSpec((k, p_pad), lambda i: (0, 0),
                                  pipeline_mode=pl.Buffered(1))
        else:
            m_spec = pl.BlockSpec((k, p_pad), lambda i: (0, 0))
        return pl.pallas_call(
            preprocess_kernel,
            out_shape=jax.ShapeDtypeStruct((n, p_pad), jnp.float32),
            grid_spec=pltpu.PrefetchScalarGridSpec(
                num_scalar_prefetch=0,
                grid=grid,
                in_specs=[
                    pl.BlockSpec((b, k), lambda i: (i, 0)),   # image block
                    m_spec,                                   # fused matrix (resident)
                ],
                out_specs=pl.BlockSpec((b, p_pad), lambda i: (i, 0)),
            ),
            compiler_params=pltpu.CompilerParams(
                dimension_semantics=("parallel",),   # shards across TCs on v7x
                vmem_limit_bytes=vmem_limit,
            ),
        )(x_flat, m)

    try:
        out_flat = jax.block_until_ready(_call(True))
    except Exception:
        # Installed JAX rejected single-buffering the constant block; use default.
        out_flat = jax.block_until_ready(_call(False))

    out = out_flat[:, :p].reshape(n, 1, image_size, image_size)
    if image_channel > 1:
        # Grayscale(num_output_channels=C) = channel replication; done in the
        # wrapper so the kernel never writes duplicated data.
        out = jnp.broadcast_to(out, (n, image_channel, image_size, image_size))
    return out


# ----------------------------------------------------------------------------
# Glue reproducing MakeDataset.forward()'s split logic (deterministic).
# ----------------------------------------------------------------------------
def make_splits(data_length: int, test_split_ratio: float, seed: int = 42):
    perm = jax.random.permutation(jax.random.PRNGKey(seed), data_length)
    n_train = int(round(data_length * (1.0 - test_split_ratio)))
    train_idx, rest = perm[:n_train], perm[n_train:]
    n_rest = rest.shape[0]
    n_val = int(round(n_rest * (1.0 - test_split_ratio)))
    val_idx, test_idx = rest[:n_val], rest[n_val:]
    return train_idx, val_idx, test_idx


if __name__ == "__main__":
    # Synthetic config (stands in for ProjectConfiguration)
    image_size = 16      # config.image_size
    image_channel = 1    # config.image_channel (Grayscale num_output_channels)
    batch = 2
    h_in, w_in = 24, 24

    key = jax.random.PRNGKey(0)
    # "raw decoded RGB images": uint8 pixels in [0, 255] (no wrapper cast pass)
    x = jax.random.randint(key, (batch, 3, h_in, w_in), 0, 256, dtype=jnp.int32)
    x = x.astype(jnp.uint8)

    out = prepare_images(x, image_size, image_channel)
    out = jax.block_until_ready(out)
    assert out.shape == (batch, image_channel, image_size, image_size)
    assert out.dtype == jnp.float32

    # Pure-JAX f32 reference (unpadded f32 fused matrix) for a sanity check.
    m_ref = jnp.asarray(build_fused_matrix(h_in, w_in, image_size, image_size))
    ref = (x.reshape(batch, -1).astype(jnp.float32) @ m_ref)
    ref = ref.reshape(batch, 1, image_size, image_size)
    if image_channel > 1:
        ref = jnp.broadcast_to(ref, out.shape)
    assert bool(jnp.allclose(out, ref, atol=1e-2, rtol=0.0)), "kernel mismatch vs reference"

    # deterministic split bookkeeping (host-side, like random_split)
    train_idx, val_idx, test_idx = make_splits(data_length=8, test_split_ratio=0.25)
    _ = (train_idx, val_idx, test_idx)

    print("KERNEL_OK")
</pallas_src>

<mosaic_0001>
module attributes {stable_mosaic.version = 11 : i64} {
  func.func @preprocess_kernel(%arg0: i32, %arg1: memref<2x1728xi8, #tpu.memory_space<vmem>>, %arg2: memref<1728x256xbf16, #tpu.memory_space<vmem>>, %arg3: memref<2x256xf32, #tpu.memory_space<vmem>>) attributes {dimension_semantics = [#tpu.dimension_semantics<parallel>], iteration_bounds = array<i64: 1>, scalar_prefetch = 0 : i64, scratch_operands = 0 : i64, tpu.core_type = #tpu.core_type<tc>, window_params = [{transform_indices = @transform_0, window_bounds = array<i64: 2, 1728>}, {pipeline_mode = #tpu.pipeline_mode<synchronous>, transform_indices = @transform_1, window_bounds = array<i64: 1728, 256>}, {transform_indices = @transform_2, window_bounds = array<i64: 2, 256>}]} {
    %c0 = arith.constant 0 : index
    %c0_0 = arith.constant 0 : index
    %0 = vector.load %arg1[%c0, %c0_0] : memref<2x1728xi8, #tpu.memory_space<vmem>>, vector<2x1728xi8>
    %1 = arith.uitofp %0 : vector<2x1728xi8> to vector<2x1728xbf16>
    %c0_1 = arith.constant 0 : index
    %c0_2 = arith.constant 0 : index
    %2 = vector.load %arg2[%c0_1, %c0_2] : memref<1728x256xbf16, #tpu.memory_space<vmem>>, vector<1728x256xbf16>
    %cst = arith.constant dense<0.000000e+00> : vector<2x256xf32>
    %3 = tpu.matmul %1, %2, %cst {dimension_numbers = #tpu.dot_dimension_numbers<[1], [0], [0], [1], [0, 0, 1, 1], [], []>} : vector<2x1728xbf16>, vector<1728x256xbf16>, vector<2x256xf32> -> vector<2x256xf32>
    %c0_3 = arith.constant 0 : index
    %c0_4 = arith.constant 0 : index
    %4 = vector.load %arg3[%c0_3, %c0_4] : memref<2x256xf32, #tpu.memory_space<vmem>>, vector<2x256xf32>
    tpu.vector_store %arg3[%c0_3, %c0_4], %3 {strides = array<i32>} : memref<2x256xf32, #tpu.memory_space<vmem>>, vector<2x256xf32>,
    return
  }
  func.func @transform_0(%arg0: i32) -> (i32, i32) {
    %c0_i32 = arith.constant 0 : i32
    %c0_i32_0 = arith.constant 0 : i32
    return %arg0, %c0_i32 : i32, i32
  }
  func.func @transform_1(%arg0: i32) -> (i32, i32) {
    %c0_i32 = arith.constant 0 : i32
    %c0_i32_0 = arith.constant 0 : i32
    %c0_i32_1 = arith.constant 0 : i32
    return %c0_i32, %c0_i32_0 : i32, i32
  }
  func.func @transform_2(%arg0: i32) -> (i32, i32) {
    %c0_i32 = arith.constant 0 : i32
    %c0_i32_0 = arith.constant 0 : i32
    return %arg0, %c0_i32 : i32, i32
  }
}

module attributes {stable_mosaic.version = 11 : i64} {
  func.func @preprocess_kernel(%arg0: i32, %arg1: memref<2x1728xi8, #tpu.memory_space<vmem>>, %arg2: memref<1728x256xbf16, #tpu.memory_space<vmem>>, %arg3: memref<2x256xf32, #tpu.memory_space<vmem>>) attributes {dimension_semantics = [#tpu.dimension_semantics<parallel>], iteration_bounds = array<i64: 1>, scalar_prefetch = 0 : i64, scratch_operands = 0 : i64, tpu.core_type = #tpu.core_type<tc>, window_params = [{transform_indices = @transform_0, window_bounds = array<i64: 2, 1728>}, {pipeline_mode = #tpu.pipeline_mode<synchronous>, transform_indices = @transform_1, window_bounds = array<i64: 1728, 256>}, {transform_indices = @transform_2, window_bounds = array<i64: 2, 256>}]} {
    %c0 = arith.constant 0 : index
    %c0_0 = arith.constant 0 : index
    %0 = vector.load %arg1[%c0, %c0_0] : memref<2x1728xi8, #tpu.memory_space<vmem>>, vector<2x1728xi8>
    %1 = arith.uitofp %0 : vector<2x1728xi8> to vector<2x1728xbf16>
    %c0_1 = arith.constant 0 : index
    %c0_2 = arith.constant 0 : index
    %2 = vector.load %arg2[%c0_1, %c0_2] : memref<1728x256xbf16, #tpu.memory_space<vmem>>, vector<1728x256xbf16>
    %cst = arith.constant dense<0.000000e+00> : vector<2x256xf32>
    %3 = tpu.matmul %1, %2, %cst {dimension_numbers = #tpu.dot_dimension_numbers<[1], [0], [0], [1], [0, 0, 1, 1], [], []>} : vector<2x1728xbf16>, vector<1728x256xbf16>, vector<2x256xf32> -> vector<2x256xf32>
    %c0_3 = arith.constant 0 : index
    %c0_4 = arith.constant 0 : index
    %4 = vector.load %arg3[%c0_3, %c0_4] : memref<2x256xf32, #tpu.memory_space<vmem>>, vector<2x256xf32>
    tpu.vector_store %arg3[%c0_3, %c0_4], %3 {strides = array<i32>} : memref<2x256xf32, #tpu.memory_space<vmem>>, vector<2x256xf32>,
    return
  }
  func.func @transform_0(%arg0: i32) -> (i32, i32) {
    %c0_i32 = arith.constant 0 : i32
    %c0_i32_0 = arith.constant 0 : i32
    return %arg0, %c0_i32 : i32, i32
  }
  func.func @transform_1(%arg0: i32) -> (i32, i32) {
    %c0_i32 = arith.constant 0 : i32
    %c0_i32_0 = arith.constant 0 : i32
    %c0_i32_1 = arith.constant 0 : i32
    return %c0_i32, %c0_i32_0 : i32, i32
  }
  func.func @transform_2(%arg0: i32) -> (i32, i32) {
    %c0_i32 = arith.constant 0 : i32
    %c0_i32_0 = arith.constant 0 : i32
    return %arg0, %c0_i32 : i32, i32
  }
}

</mosaic_0001>

<bundles_post_ra>
// kernel: tpu_custom_call.1
= control target key start
LH: loop header
LB: loop body
LE: loop exit
PB: predicated region body
PF: predicated region fallthrough
CT: control target
= control target key end

     0   :  { %7 = vsyncpa [#allocation3], 0  ;;  %s2436_s0 = inlined_call_operand.hbm [shape: u8[2,1728], index: 0, kind: input, shape index: {}]   ;;  %s2437_s1 = inlined_call_operand.hbm [shape: bf16[1728,256], index: 1, kind: input, shape index: {}]   ;;  %s2438_s2 = inlined_call_operand.hbm [shape: f32[2,256], index: 2, kind: output, shape index: {}]  }
   0x1   :  { %8 = vsyncpa [#allocation6], 0 }
   0x2   :  { %9 = vsyncpa [#allocation4], 0  ;;  %s2371_s9 = smov [#allocation2]   ;;  %s2372_s11 = smov [#allocation5]  }
   0x3   :  { %s16_s10 = sshll.u32 %s2371_s9, 4  ;;  %s25_s12 = sshll.u32 %s2372_s11, 4  ;;  %s17_s10 = int_to_ptr.vmem [resolvable:$true] %s16_s10  ;;  %s26_s12 = int_to_ptr.vmem [resolvable:$true] %s25_s12 }
   0x4   :  { %s2313_s13 = scalar_lea.vmem %s17_s10, 224  ;;  %p2318_p1 = scmp.lt.s32.totalorder %s17_s10, %s17_s10 }
   0x5   :  { %p2314_p0 = scmp.ne.s32.totalorder %s17_s10, %s2313_s13  ;;  %p2319_p2 = scmp.lt.s32.totalorder %s2313_s13, %s2313_s13 }
   0x7   :  { %p2320_p3 = por %p2319_p2, %p2318_p1 }
   0x9   :  { %p2321_p4 = pnand %p2320_p3, %p2314_p0 }
   0xb   :  { %2324 = shalt.err (!%p2321_p4)
}
   0xc   :  { %19 = dma.hbm_to_vmem [thread:$0]  %s2436_s0, 224, %s17_s10, [#allocation3]  }
   0xd   :  { %s2333_s16 = scalar_lea.vmem %s26_s12, 27648  ;;  %p2338_p6 = scmp.lt.s32.totalorder %s26_s12, %s26_s12 }
   0xe   :  { %p2334_p5 = scmp.ne.s32.totalorder %s26_s12, %s2333_s16  ;;  %p2339_p7 = scmp.lt.s32.totalorder %s2333_s16, %s2333_s16 }
  0x10   :  { %p2340_p8 = por %p2339_p7, %p2338_p6 }
  0x12   :  { %p2341_p9 = pnand %p2340_p8, %p2334_p5 }
  0x14   :  { %2344 = shalt.err (!%p2341_p9)
}
  0x15   :  { %s2373_s17 = smov 128   ;;  %s2374_s18 = smov 8  }
  0x16   :  { %31 = dma.hbm_to_vmem [thread:$0]  %s2437_s1, 27648, %s26_s12, [#allocation6], %s2373_s17, %s2373_s17, %s2374_s18  }
  0x17   :  { %2365 = dma.done.wait [#allocation3], 224  }
  0x18   :  { %2366 = vsyncadd [#allocation3], 4294967072 }
  0x19   :  { %2367 = dma.done.wait [#allocation6], 27648  }
  0x1a   :  { %2368 = vsyncadd [#allocation6], 4294939648  ;;  %v1979_v0 = vld [vmem:[#allocation5 + $0x74] ss:$8 sps:$4 sm:$0xff]   ;;  %v1983_v2 = vld [vmem:[#allocation5 + $0x70] ss:$8 sps:$4 sm:$0xff]   ;;  %v45_v38 = vlaneseq }
  0x1b   :  { %v1981_v1 = vld [vmem:[#allocation5 + $0x174] ss:$8 sps:$4 sm:$0xff]   ;;  %1426 = vmatprep.subr.bf16.mxu0 %v1979_v0  ;;  %v1984_v3 = vld [vmem:[#allocation5 + $0x170] ss:$8 sps:$4 sm:$0xff]   ;;  %v1985_v4 = vld [vmem:[#allocation5 + $0x64] ss:$8 sps:$4 sm:$0xff]  }
  0x1c   :  { %1467 = vmatprep.subr.bf16.mxu1 %v1981_v1  ;;  %1427 = vmatpush1.bf16.msra.mxu0 %v1983_v2  ;;  %v1987_v5 = vld [vmem:[#allocation5 + $0x164] ss:$8 sps:$4 sm:$0xff]   ;;  %v1989_v6 = vld [vmem:[#allocation5 + $0x60] ss:$8 sps:$4 sm:$0xff]   ;;  %v1991_v8 = vld [vmem:[#allocation5 + $0x54] ss:$8 sps:$4 sm:$0xff]  }
  0x1d   :  { %1468 = vmatpush1.bf16.msra.mxu1 %v1984_v3  ;;  %1428 = vmatprep.subr.bf16.mxu0 %v1985_v4  ;;  %v1990_v7 = vld [vmem:[#allocation5 + $0x160] ss:$8 sps:$4 sm:$0xff]   ;;  %v1993_v9 = vld [vmem:[#allocation5 + $0x154] ss:$8 sps:$4 sm:$0xff]   ;;  %v1995_v10 = vld [vmem:[#allocation5 + $0x50] ss:$8 sps:$4 sm:$0xff]  }
  0x1e   :  { %1469 = vmatprep.subr.bf16.mxu1 %v1987_v5  ;;  %v1996_v11 = vld [vmem:[#allocation5 + $0x150] ss:$8 sps:$4 sm:$0xff]   ;;  %v1997_v12 = vld [vmem:[#allocation5 + $0x44] ss:$8 sps:$4 sm:$0xff]   ;;  %v2001_v14 = vld [vmem:[#allocation5 + $0x40] ss:$8 sps:$4 sm:$0xff]  }
  0x1f   :  { %v1999_v13 = vld [vmem:[#allocation5 + $0x144] ss:$8 sps:$4 sm:$0xff]   ;;  %v2002_v15 = vld [vmem:[#allocation5 + $0x140] ss:$8 sps:$4 sm:$0xff]   ;;  %v2003_v16 = vld [vmem:[#allocation5 + $0x34] ss:$8 sps:$4 sm:$0xff]  }
  0x20   :  { %1429 = vmatpush1.bf16.msra.mxu0 %v1989_v6  ;;  %v2005_v17 = vld [vmem:[#allocation5 + $0x134] ss:$8 sps:$4 sm:$0xff]   ;;  %v2007_v18 = vld [vmem:[#allocation5 + $0x30] ss:$8 sps:$4 sm:$0xff]   ;;  %v2009_v20 = vld [vmem:[#allocation5 + $0x24] ss:$8 sps:$4 sm:$0xff]  }
  0x21   :  { %1470 = vmatpush1.bf16.msra.mxu1 %v1990_v7  ;;  %1430 = vmatprep.subr.bf16.mxu0 %v1991_v8  ;;  %v2008_v19 = vld [vmem:[#allocation5 + $0x130] ss:$8 sps:$4 sm:$0xff]   ;;  %v2011_v21 = vld [vmem:[#allocation5 + $0x124] ss:$8 sps:$4 sm:$0xff]   ;;  %v2013_v22 = vld [vmem:[#allocation5 + $0x20] ss:$8 sps:$4 sm:$0xff]  }
  0x22   :  { %1471 = vmatprep.subr.bf16.mxu1 %v1993_v9  ;;  %v2014_v23 = vld [vmem:[#allocation5 + $0x120] ss:$8 sps:$4 sm:$0xff]   ;;  %v2015_v24 = vld [vmem:[#allocation5 + $0x14] ss:$8 sps:$4 sm:$0xff]   ;;  %v2019_v26 = vld [vmem:[#allocation5 + $0x10] ss:$8 sps:$4 sm:$0xff]  }
  0x23   :  { %v2017_v25 = vld [vmem:[#allocation5 + $0x114] ss:$8 sps:$4 sm:$0xff]   ;;  %v2020_v27 = vld [vmem:[#allocation5 + $0x110] ss:$8 sps:$4 sm:$0xff]   ;;  %v2021_v28 = vld [vmem:[#allocation5 + $0x4] ss:$8 sps:$4 sm:$0xff]  }
  0x24   :  { %1431 = vmatpush1.bf16.msra.mxu0 %v1995_v10  ;;  %v2023_v29 = vld [vmem:[#allocation5 + $0x104] ss:$8 sps:$4 sm:$0xff]   ;;  %v2025_v30 = vld [vmem:[#allocation5] ss:$8 sps:$4 sm:$0xff]   ;;  %v2027_v32 = vld [vmem:[#allocation5 + $0xf4] ss:$8 sps:$4 sm:$0xff]  }
  0x25   :  { %1472 = vmatpush1.bf16.msra.mxu1 %v1996_v11  ;;  %1432 = vmatprep.subr.bf16.mxu0 %v1997_v12  ;;  %v2026_v31 = vld [vmem:[#allocation5 + $0x100] ss:$8 sps:$4 sm:$0xff]   ;;  %v2029_v33 = vld [vmem:[#allocation5 + $0x1f4] ss:$8 sps:$4 sm:$0xff]   ;;  %v2031_v34 = vld [vmem:[#allocation5 + $0xf0] ss:$8 sps:$4 sm:$0xff]  }
  0x26   :  { %1473 = vmatprep.subr.bf16.mxu1 %v1999_v13  ;;  %v2032_v35 = vld [vmem:[#allocation5 + $0x1f0] ss:$8 sps:$4 sm:$0xff]   ;;  %v2375_v36 = vmov 1935823168   ;;  %v2033_v39 = vld [vmem:[#allocation5 + $0xe4] ss:$8 sps:$4 sm:$0xff]  }
  0x27   :  { %v43_v37 = vunpack.c.l.s4 %v2375_v36  ;;  %v2035_v40 = vld [vmem:[#allocation5 + $0x1e4] ss:$8 sps:$4 sm:$0xff]   ;;  %v2037_v41 = vld [vmem:[#allocation5 + $0xe0] ss:$8 sps:$4 sm:$0xff]   ;;  %v46_v43 = vshrl.u32 %v45_v38, 7  ;;  %v39_v52 = vld [vmem:[#allocation2] sm:$0xff] }
  0x28   :  { %1433 = vmatpush1.bf16.msra.mxu0 %v2001_v14  ;;  %v2038_v44 = vld [vmem:[#allocation5 + $0x1e0] ss:$8 sps:$4 sm:$0xff]   ;;  %v2039_v45 = vld [vmem:[#allocation5 + $0xd4] ss:$8 sps:$4 sm:$0xff]   ;;  %v2043_v47 = vld [vmem:[#allocation5 + $0xd0] ss:$8 sps:$4 sm:$0xff]   ;;  %v41_v6 = vcombine.high %v39_v52, %v39_v52 }
  0x29   :  { %1474 = vmatpush1.bf16.msra.mxu1 %v2002_v15  ;;  %1434 = vmatprep.subr.bf16.mxu0 %v2003_v16  ;;  %v44_v42 = vunpack.c.0.s8 %v43_v37  ;;  %v2041_v46 = vld [vmem:[#allocation5 + $0x1d4] ss:$8 sps:$4 sm:$0xff]   ;;  %v2044_v48 = vld [vmem:[#allocation5 + $0x1d0] ss:$8 sps:$4 sm:$0xff]   ;;  %v2045_v50 = vld [vmem:[#allocation5 + $0xc4] ss:$8 sps:$4 sm:$0xff]  }
  0x2a   :  { %1475 = vmatprep.subr.bf16.mxu1 %v2005_v17  ;;  %v2047_v51 = vld [vmem:[#allocation5 + $0x1c4] ss:$8 sps:$4 sm:$0xff]   ;;  %v2049_v53 = vld [vmem:[#allocation5 + $0xc0] ss:$8 sps:$4 sm:$0xff]   ;;  %v2051_v56 = vld [vmem:[#allocation5 + $0xb4] ss:$8 sps:$4 sm:$0xff]  }
  0x2b   :  { %v2398_v49 = vsub.s32 %v44_v42, %v46_v43  ;;  %v2050_v55 = vld [vmem:[#allocation5 + $0x1c0] ss:$8 sps:$4 sm:$0xff]   ;;  %v2053_v57 = vld [vmem:[#allocation5 + $0x1b4] ss:$8 sps:$4 sm:$0xff]   ;;  %v2055_v60 = vld [vmem:[#allocation5 + $0xb0] ss:$8 sps:$4 sm:$0xff]  }
  0x2c   :  { %1435 = vmatpush1.bf16.msra.mxu0 %v2007_v18  ;;  %v2056_v63 = vld [vmem:[#allocation5 + $0x1b0] ss:$8 sps:$4 sm:$0xff]   ;;  %v2057_v0 = vld [vmem:[#allocation5 + $0xa4] ss:$8 sps:$4 sm:$0xff]   ;;  %v2061_v2 = vld [vmem:[#allocation5 + $0xa0] ss:$8 sps:$4 sm:$0xff]  }
  0x2d   :  { %1476 = vmatpush1.bf16.msra.mxu1 %v2008_v19  ;;  %1436 = vmatprep.subr.bf16.mxu0 %v2009_v20  ;;  %v48_v54 = vrot.slane %v39_v52, %v2398_v49  ;;  %v2059_v1 = vld [vmem:[#allocation5 + $0x1a4] ss:$8 sps:$4 sm:$0xff]   ;;  %v2062_v3 = vld [vmem:[#allocation5 + $0x1a0] ss:$8 sps:$4 sm:$0xff]   ;;  %v2063_v4 = vld [vmem:[#allocation5 + $0x94] ss:$8 sps:$4 sm:$0xff]   ;;  %v55_v11 = vrot.slane %v41_v6, %v2398_v49 }
  0x2e   :  { %1477 = vmatprep.subr.bf16.mxu1 %v2011_v21  ;;  %v2065_v5 = vld [vmem:[#allocation5 + $0x194] ss:$8 sps:$4 sm:$0xff]   ;;  %v2067_v7 = vld [vmem:[#allocation5 + $0x90] ss:$8 sps:$4 sm:$0xff]   ;;  %v2069_v9 = vld [vmem:[#allocation5 + $0x84] ss:$8 sps:$4 sm:$0xff]  }
  0x2f   :  { %v71_v58 = vunpack.c.l.u8.bf16 %v48_v54  ;;  %v72_v59 = vunpack.c.h.u8.bf16 %v48_v54  ;;  %v2068_v8 = vld [vmem:[#allocation5 + $0x190] ss:$8 sps:$4 sm:$0xff]   ;;  %v2071_v10 = vld [vmem:[#allocation5 + $0x184] ss:$8 sps:$4 sm:$0xff]   ;;  %v2073_v12 = vld [vmem:[#allocation5 + $0x80] ss:$8 sps:$4 sm:$0xff]   ;;  %v2402_v16 = vunpack.c.l.u8.bf16 %v55_v11  ;;  %v2404_v17 = vunpack.c.h.u8.bf16 %v55_v11 }
  0x30   :  { %1437 = vmatpush1.bf16.msra.mxu0 %v2013_v22  ;;  %v2074_v13 = vld [vmem:[#allocation5 + $0x180] ss:$8 sps:$4 sm:$0xff]   ;;  %v2078_v14 = vld [vmem:[#allocation5 + $0x274] ss:$8 sps:$4 sm:$0xff]   ;;  %v2076_v20 = vld [vmem:[#allocation5 + $0x270] ss:$8 sps:$4 sm:$0xff]  }
  0x31   :  { %1478 = vmatpush1.bf16.msra.mxu1 %v2014_v23  ;;  %1438 = vmatprep.subr.bf16.mxu0 %v2015_v24  ;;  %v1742_v61 = vcombine.high %v71_v58, %v71_v58  ;;  %v1744_v62 = vcombine.high %v72_v59, %v72_v59  ;;  %v2081_v15 = vld [vmem:[#allocation5 + $0x374] ss:$8 sps:$4 sm:$0xff]   ;;  %v1741_v18 = vcombine.low %v71_v58, %v71_v58  ;;  %v2079_v21 = vld [vmem:[#allocation5 + $0x370] ss:$8 sps:$4 sm:$0xff]   ;;  %v2084_v22 = vld [vmem:[#allocation5 + $0x264] ss:$8 sps:$4 sm:$0xff]  }
  0x32   :  { %1479 = vmatprep.subr.bf16.mxu1 %v2017_v25  ;;  %v1743_v19 = vcombine.low %v72_v59, %v72_v59  ;;  %v2087_v23 = vld [vmem:[#allocation5 + $0x364] ss:$8 sps:$4 sm:$0xff]   ;;  %v1746_v24 = vcombine.high %v2402_v16, %v2402_v16  ;;  %v1748_v25 = vcombine.high %v2404_v17, %v2404_v17  ;;  %v2102_v36 = vld [vmem:[#allocation5 + $0x234] ss:$8 sps:$4 sm:$0xff]   ;;  %v2100_v38 = vld [vmem:[#allocation5 + $0x230] ss:$8 sps:$4 sm:$0xff]  }
  0x33   :  { %1458 = vmatprep.mubr.bf16.mxu0 %v1742_v61  ;;  %1499 = vmatprep.mubr.bf16.mxu1 %v1744_v62  ;;  %v2105_v37 = vld [vmem:[#allocation5 + $0x334] ss:$8 sps:$4 sm:$0xff]   ;;  %v2106_v42 = vld [vmem:[#allocation5 + $0x220] ss:$8 sps:$4 sm:$0xff]   ;;  %v2135_v58 = vld [vmem:[#allocation5 + $0x3e4] ss:$8 sps:$4 sm:$0xff]  }
  0x34   :  { %1439 = vmatpush1.bf16.msra.mxu0 %v2019_v26  ;;  %v2082_v26 = vld [vmem:[#allocation5 + $0x260] ss:$8 sps:$4 sm:$0xff]   ;;  %v2129_v54 = vld [vmem:[#allocation5 + $0x3f4] ss:$8 sps:$4 sm:$0xff]   ;;  %vm1422_vm0 = vcmask 523264   ;;  %s2376_s0 = smov [#allocation7]  }
  0x35   :  { %1480 = vmatpush1.bf16.msra.mxu1 %v2020_v27  ;;  %1440 = vmatprep.subr.bf16.mxu0 %v2021_v28  ;;  %v2085_v27 = vld [vmem:[#allocation5 + $0x360] ss:$8 sps:$4 sm:$0xff]   ;;  %v2090_v28 = vld [vmem:[#allocation5 + $0x254] ss:$8 sps:$4 sm:$0xff]   ;;  %s1731_s1 = sshll.u32 %s2376_s0, 4  ;;  %s1732_s1 = int_to_ptr.vmem [resolvable:$true] %s1731_s1 }
  0x36   :  { %1481 = vmatprep.subr.bf16.mxu1 %v2023_v29  ;;  %v2093_v29 = vld [vmem:[#allocation5 + $0x354] ss:$8 sps:$4 sm:$0xff]   ;;  %v2109_v43 = vld [vmem:[#allocation5 + $0x320] ss:$8 sps:$4 sm:$0xff]   ;;  %s2345_s21 = scalar_lea.vmem %s1732_s1, 64  ;;  %p2350_p11 = scmp.lt.s32.totalorder %s1732_s1, %s1732_s1 }
  0x37   :  { %v2121_v52 = vld [vmem:[#allocation5 + $0x300] ss:$8 sps:$4 sm:$0xff]   ;;  %v2138_v61 = vld [vmem:[#allocation5 + $0x2d4] ss:$8 sps:$4 sm:$0xff]   ;;  %p2346_p10 = scmp.ne.s32.totalorder %s1732_s1, %s2345_s21  ;;  %p2351_p12 = scmp.lt.s32.totalorder %s2345_s21, %s2345_s21 }
  0x38   :  { %1441 = vmatpush1.bf16.msra.mxu0 %v2025_v30  ;;  %v2088_v30 = vld [vmem:[#allocation5 + $0x250] ss:$8 sps:$4 sm:$0xff]   ;;  %v2130_v59 = vld [vmem:[#allocation5 + $0x2e0] ss:$8 sps:$4 sm:$0xff]   ;;  %v2141_v62 = vld [vmem:[#allocation5 + $0x3d4] ss:$8 sps:$4 sm:$0xff]  }
  0x39   :  { %1482 = vmatpush1.bf16.msra.mxu1 %v2026_v31  ;;  %1442 = vmatprep.subr.bf16.mxu0 %v2027_v32  ;;  %v2091_v31 = vld [vmem:[#allocation5 + $0x350] ss:$8 sps:$4 sm:$0xff]   ;;  %v2096_v32 = vld [vmem:[#allocation5 + $0x244] ss:$8 sps:$4 sm:$0xff]   ;;  %v2153_v6 = vld [vmem:[#allocation5 + $0x3b4] ss:$8 sps:$4 sm:$0xff]   ;;  %p2352_p13 = por %p2351_p12, %p2350_p11 }
  0x3a   :  { %1483 = vmatprep.subr.bf16.mxu1 %v2029_v33  ;;  %v2099_v33 = vld [vmem:[#allocation5 + $0x344] ss:$8 sps:$4 sm:$0xff]   ;;  %v2154_v11 = vld [vmem:[#allocation5 + $0x2a0] ss:$8 sps:$4 sm:$0xff]  }
  0x3b   :  { %p2353_p0 = pnand %p2352_p13, %p2346_p10 }
  0x3c   :  { %1443 = vmatpush2.bf16.msra.mxu0 %v2031_v34  ;;  %v2094_v34 = vld [vmem:[#allocation5 + $0x240] ss:$8 sps:$4 sm:$0xff]  }
  0x3d   :  { %1484 = vmatpush2.bf16.msra.mxu1 %v2032_v35  ;;  %1444 = vmatprep.subr.bf16.mxu0 %v2033_v39  ;;  %v2097_v35 = vld [vmem:[#allocation5 + $0x340] ss:$8 sps:$4 sm:$0xff]   ;;  %v2103_v39 = vld [vmem:[#allocation5 + $0x330] ss:$8 sps:$4 sm:$0xff]  }
  0x3e   :  { %1485 = vmatprep.subr.bf16.mxu1 %v2035_v40  ;;  %v2108_v40 = vld [vmem:[#allocation5 + $0x224] ss:$8 sps:$4 sm:$0xff]  }
  0x40   :  { %1445 = vmatpush2.bf16.msra.mxu0 %v2037_v41  ;;  %v2111_v41 = vld [vmem:[#allocation5 + $0x324] ss:$8 sps:$4 sm:$0xff]  }
  0x41   :  { %1486 = vmatpush2.bf16.msra.mxu1 %v2038_v44  ;;  %1446 = vmatprep.subr.bf16.mxu0 %v2039_v45  ;;  %v2114_v44 = vld [vmem:[#allocation5 + $0x214] ss:$8 sps:$4 sm:$0xff]  }
  0x42   :  { %1487 = vmatprep.subr.bf16.mxu1 %v2041_v46  ;;  %v2117_v45 = vld [vmem:[#allocation5 + $0x314] ss:$8 sps:$4 sm:$0xff]   ;;  %v2112_v46 = vld [vmem:[#allocation5 + $0x210] ss:$8 sps:$4 sm:$0xff]  }
  0x44   :  { %1447 = vmatpush2.bf16.msra.mxu0 %v2043_v47  ;;  %v2115_v47 = vld [vmem:[#allocation5 + $0x310] ss:$8 sps:$4 sm:$0xff]  }
  0x45   :  { %1488 = vmatpush2.bf16.msra.mxu1 %v2044_v48  ;;  %1448 = vmatprep.subr.bf16.mxu0 %v2045_v50  ;;  %v2120_v48 = vld [vmem:[#allocation5 + $0x204] ss:$8 sps:$4 sm:$0xff]  }
  0x46   :  { %1489 = vmatprep.subr.bf16.mxu1 %v2047_v51  ;;  %v2123_v50 = vld [vmem:[#allocation5 + $0x304] ss:$8 sps:$4 sm:$0xff]   ;;  %v2118_v51 = vld [vmem:[#allocation5 + $0x200] ss:$8 sps:$4 sm:$0xff]  }
  0x48   :  { %1449 = vmatpush2.bf16.msra.mxu0 %v2049_v53  ;;  %v2126_v53 = vld [vmem:[#allocation5 + $0x2f4] ss:$8 sps:$4 sm:$0xff]  }
  0x49   :  { %1490 = vmatpush2.bf16.msra.mxu1 %v2050_v55  ;;  %1450 = vmatprep.subr.bf16.mxu0 %v2051_v56  ;;  %v2124_v55 = vld [vmem:[#allocation5 + $0x2f0] ss:$8 sps:$4 sm:$0xff]  }
  0x4a   :  { %1491 = vmatprep.subr.bf16.mxu1 %v2053_v57  ;;  %v2127_v56 = vld [vmem:[#allocation5 + $0x3f0] ss:$8 sps:$4 sm:$0xff]   ;;  %v2132_v57 = vld [vmem:[#allocation5 + $0x2e4] ss:$8 sps:$4 sm:$0xff]  }
  0x4c   :  { %1451 = vmatpush2.bf16.msra.mxu0 %v2055_v60  ;;  %v2133_v60 = vld [vmem:[#allocation5 + $0x3e0] ss:$8 sps:$4 sm:$0xff]  }
  0x4d   :  { %1492 = vmatpush2.bf16.msra.mxu1 %v2056_v63  ;;  %1452 = vmatprep.subr.bf16.mxu0 %v2057_v0  ;;  %v2136_v63 = vld [vmem:[#allocation5 + $0x2d0] ss:$8 sps:$4 sm:$0xff]  }
  0x4e   :  { %1493 = vmatprep.subr.bf16.mxu1 %v2059_v1  ;;  %v2139_v0 = vld [vmem:[#allocation5 + $0x3d0] ss:$8 sps:$4 sm:$0xff]   ;;  %v2144_v1 = vld [vmem:[#allocation5 + $0x2c4] ss:$8 sps:$4 sm:$0xff]  }
  0x50   :  { %1453 = vmatpush2.bf16.msra.mxu0 %v2061_v2  ;;  %v2147_v2 = vld [vmem:[#allocation5 + $0x3c4] ss:$8 sps:$4 sm:$0xff]  }
  0x51   :  { %1494 = vmatpush2.bf16.msra.mxu1 %v2062_v3  ;;  %1454 = vmatprep.subr.bf16.mxu0 %v2063_v4  ;;  %v2142_v3 = vld [vmem:[#allocation5 + $0x2c0] ss:$8 sps:$4 sm:$0xff]  }
  0x52   :  { %1495 = vmatprep.subr.bf16.mxu1 %v2065_v5  ;;  %v2145_v4 = vld [vmem:[#allocation5 + $0x3c0] ss:$8 sps:$4 sm:$0xff]   ;;  %v2150_v5 = vld [vmem:[#allocation5 + $0x2b4] ss:$8 sps:$4 sm:$0xff]  }
  0x54   :  { %1455 = vmatpush2.bf16.msra.mxu0 %v2067_v7  ;;  %v2148_v7 = vld [vmem:[#allocation5 + $0x2b0] ss:$8 sps:$4 sm:$0xff]  }
  0x55   :  { %1496 = vmatpush2.bf16.msra.mxu1 %v2068_v8  ;;  %1456 = vmatprep.subr.bf16.mxu0 %v2069_v9  ;;  %v2151_v8 = vld [vmem:[#allocation5 + $0x3b0] ss:$8 sps:$4 sm:$0xff]   ;;  %v2156_v9 = vld [vmem:[#allocation5 + $0x2a4] ss:$8 sps:$4 sm:$0xff]  }
  0x56   :  { %1497 = vmatprep.subr.bf16.mxu1 %v2071_v10  ;;  %v2159_v10 = vld [vmem:[#allocation5 + $0x3a4] ss:$8 sps:$4 sm:$0xff]  }
  0x58   :  { %1457 = vmatpush2.bf16.msra.mxu0 %v2073_v12  ;;  %v2157_v12 = vld [vmem:[#allocation5 + $0x3a0] ss:$8 sps:$4 sm:$0xff]  }
  0x59   :  { %1498 = vmatpush2.bf16.msra.mxu1 %v2074_v13  ;;  %1508 = vmatprep.subr.bf16.mxu0 %v2078_v14  ;;  %v2162_v13 = vld [vmem:[#allocation5 + $0x294] ss:$8 sps:$4 sm:$0xff]  }
  0x5a   :  { %1549 = vmatprep.subr.bf16.mxu1 %v2081_v15  ;;  %v2165_v14 = vld [vmem:[#allocation5 + $0x394] ss:$8 sps:$4 sm:$0xff]   ;;  %v2160_v15 = vld [vmem:[#allocation5 + $0x290] ss:$8 sps:$4 sm:$0xff]  }
  0x5b   :  { %1459 = vmatmul.mubr.bf16.vlgmr.msra.gmra.mxu0 %v1741_v18  ;;  %v2163_v18 = vld [vmem:[#allocation5 + $0x390] ss:$8 sps:$4 sm:$0xff]  }
  0x5c   :  { %1500 = vmatmul.mubr.bf16.vlgmr.msra.gmra.mxu1 %v1743_v19  ;;  %1509 = vmatpush1.bf16.msra.mxu0 %v2076_v20  ;;  %v2168_v19 = vld [vmem:[#allocation5 + $0x284] ss:$8 sps:$4 sm:$0xff]  }
  0x5d   :  { %1550 = vmatpush1.bf16.msra.mxu1 %v2079_v21  ;;  %1510 = vmatprep.subr.bf16.mxu0 %v2084_v22  ;;  %v2171_v20 = vld [vmem:[#allocation5 + $0x384] ss:$8 sps:$4 sm:$0xff]   ;;  %v2166_v21 = vld [vmem:[#allocation5 + $0x280] ss:$8 sps:$4 sm:$0xff]  }
  0x5e   :  { %1551 = vmatprep.subr.bf16.mxu1 %v2087_v23  ;;  %1540 = vmatprep.mubr.bf16.mxu0 %v1746_v24  ;;  %v2169_v22 = vld [vmem:[#allocation5 + $0x380] ss:$8 sps:$4 sm:$0xff]   ;;  %v2174_v23 = vld [vmem:[#allocation5 + $0x474] ss:$8 sps:$4 sm:$0xff]  }
  0x5f   :  { %1581 = vmatprep.mubr.bf16.mxu1 %v1748_v25  ;;  %v2177_v24 = vld [vmem:[#allocation5 + $0x574] ss:$8 sps:$4 sm:$0xff]   ;;  %v1745_v25 = vcombine.low %v2402_v16, %v2402_v16 }
  0x60   :  { %1511 = vmatpush1.bf16.msra.mxu0 %v2082_v26  ;;  %v2172_v26 = vld [vmem:[#allocation5 + $0x470] ss:$8 sps:$4 sm:$0xff]  }
  0x61   :  { %1552 = vmatpush1.bf16.msra.mxu1 %v2085_v27  ;;  %1512 = vmatprep.subr.bf16.mxu0 %v2090_v28  ;;  %v1747_v27 = vcombine.low %v2404_v17, %v2404_v17  ;;  %v2175_v28 = vld [vmem:[#allocation5 + $0x570] ss:$8 sps:$4 sm:$0xff]   ;;  %v2178_v17 = vld [vmem:[#allocation5 + $0x460] ss:$8 sps:$4 sm:$0xff]  }
  0x62   :  { %1553 = vmatprep.subr.bf16.mxu1 %v2093_v29  ;;  %v2414_v29 = vld [vmem:[#allocation2 + $0x8] sm:$0x3f] }
  0x64   :  { %1513 = vmatpush1.bf16.msra.mxu0 %v2088_v30  ;;  %v2180_v30 = vld [vmem:[#allocation5 + $0x464] ss:$8 sps:$4 sm:$0xff]  }
  0x65   :  { %1554 = vmatpush1.bf16.msra.mxu1 %v2091_v31  ;;  %1514 = vmatprep.subr.bf16.mxu0 %v2096_v32  ;;  %v2183_v31 = vld [vmem:[#allocation5 + $0x564] ss:$8 sps:$4 sm:$0xff]   ;;  %v63_v32 = vrot.slane %v2414_v29, %v2398_v49 }
  0x66   :  { %1555 = vmatprep.subr.bf16.mxu1 %v2099_v33 }
  0x67   :  { %v2418_v33 = vunpack.c.l.u8.bf16 %v63_v32  ;;  %v2420_v16 = vunpack.c.h.u8.bf16 %v63_v32  ;;  %v2267_v32 = vld [vmem:[#allocation5 + $0x584] ss:$8 sps:$4 sm:$0xff]  }
  0x68   :  { %1515 = vmatpush1.bf16.msra.mxu0 %v2094_v34  ;;  %v2181_v34 = vld [vmem:[#allocation5 + $0x560] ss:$8 sps:$4 sm:$0xff]  }
  0x69   :  { %1556 = vmatpush1.bf16.msra.mxu1 %v2097_v35  ;;  %1516 = vmatprep.subr.bf16.mxu0 %v2102_v36  ;;  %v2186_v35 = vld [vmem:[#allocation5 + $0x454] ss:$8 sps:$4 sm:$0xff]  }
  0x6a   :  { %1557 = vmatprep.subr.bf16.mxu1 %v2105_v37  ;;  %v2189_v36 = vld [vmem:[#allocation5 + $0x554] ss:$8 sps:$4 sm:$0xff]   ;;  %v1750_v37 = vcombine.high %v2418_v33, %v2418_v33 }
  0x6c   :  { %1517 = vmatpush1.bf16.msra.mxu0 %v2100_v38  ;;  %v1752_v38 = vcombine.high %v2420_v16, %v2420_v16 }
  0x6d   :  { %1558 = vmatpush1.bf16.msra.mxu1 %v2103_v39  ;;  %1518 = vmatprep.subr.bf16.mxu0 %v2108_v40  ;;  %v2184_v39 = vld [vmem:[#allocation5 + $0x450] ss:$8 sps:$4 sm:$0xff]  }
  0x6e   :  { %1559 = vmatprep.subr.bf16.mxu1 %v2111_v41  ;;  %v2187_v40 = vld [vmem:[#allocation5 + $0x550] ss:$8 sps:$4 sm:$0xff]   ;;  %v2192_v41 = vld [vmem:[#allocation5 + $0x444] ss:$8 sps:$4 sm:$0xff]  }
  0x70   :  { %1519 = vmatpush1.bf16.msra.mxu0 %v2106_v42  ;;  %v2195_v42 = vld [vmem:[#allocation5 + $0x544] ss:$8 sps:$4 sm:$0xff]  }
  0x71   :  { %1560 = vmatpush1.bf16.msra.mxu1 %v2109_v43  ;;  %1520 = vmatprep.subr.bf16.mxu0 %v2114_v44  ;;  %v2190_v43 = vld [vmem:[#allocation5 + $0x440] ss:$8 sps:$4 sm:$0xff]  }
  0x72   :  { %1561 = vmatprep.subr.bf16.mxu1 %v2117_v45  ;;  %v2193_v44 = vld [vmem:[#allocation5 + $0x540] ss:$8 sps:$4 sm:$0xff]   ;;  %v2198_v45 = vld [vmem:[#allocation5 + $0x434] ss:$8 sps:$4 sm:$0xff]  }
  0x74   :  { %1521 = vmatpush1.bf16.msra.mxu0 %v2112_v46  ;;  %v2201_v46 = vld [vmem:[#allocation5 + $0x534] ss:$8 sps:$4 sm:$0xff]  }
  0x75   :  { %1562 = vmatpush1.bf16.msra.mxu1 %v2115_v47  ;;  %1522 = vmatprep.subr.bf16.mxu0 %v2120_v48  ;;  %v2196_v47 = vld [vmem:[#allocation5 + $0x430] ss:$8 sps:$4 sm:$0xff]  }
  0x76   :  { %1563 = vmatprep.subr.bf16.mxu1 %v2123_v50  ;;  %v2199_v48 = vld [vmem:[#allocation5 + $0x530] ss:$8 sps:$4 sm:$0xff]   ;;  %v2204_v50 = vld [vmem:[#allocation5 + $0x424] ss:$8 sps:$4 sm:$0xff]  }
  0x78   :  { %1523 = vmatpush1.bf16.msra.mxu0 %v2118_v51  ;;  %v2207_v51 = vld [vmem:[#allocation5 + $0x524] ss:$8 sps:$4 sm:$0xff]  }
  0x79   :  { %1564 = vmatpush1.bf16.msra.mxu1 %v2121_v52  ;;  %1524 = vmatprep.subr.bf16.mxu0 %v2126_v53  ;;  %v2202_v52 = vld [vmem:[#allocation5 + $0x420] ss:$8 sps:$4 sm:$0xff]  }
  0x7a   :  { %1565 = vmatprep.subr.bf16.mxu1 %v2129_v54  ;;  %v2205_v53 = vld [vmem:[#allocation5 + $0x520] ss:$8 sps:$4 sm:$0xff]   ;;  %v2210_v54 = vld [vmem:[#allocation5 + $0x414] ss:$8 sps:$4 sm:$0xff]  }
  0x7c   :  { %1525 = vmatpush2.bf16.msra.mxu0 %v2124_v55  ;;  %v2213_v55 = vld [vmem:[#allocation5 + $0x514] ss:$8 sps:$4 sm:$0xff]  }
  0x7d   :  { %1566 = vmatpush2.bf16.msra.mxu1 %v2127_v56  ;;  %1526 = vmatprep.subr.bf16.mxu0 %v2132_v57  ;;  %v2208_v56 = vld [vmem:[#allocation5 + $0x410] ss:$8 sps:$4 sm:$0xff]  }
  0x7e   :  { %1567 = vmatprep.subr.bf16.mxu1 %v2135_v58  ;;  %v2211_v57 = vld [vmem:[#allocation5 + $0x510] ss:$8 sps:$4 sm:$0xff]   ;;  %v2216_v58 = vld [vmem:[#allocation5 + $0x404] ss:$8 sps:$4 sm:$0xff]  }
  0x80   :  { %1527 = vmatpush2.bf16.msra.mxu0 %v2130_v59  ;;  %v2219_v59 = vld [vmem:[#allocation5 + $0x504] ss:$8 sps:$4 sm:$0xff]  }
  0x81   :  { %1568 = vmatpush2.bf16.msra.mxu1 %v2133_v60  ;;  %1528 = vmatprep.subr.bf16.mxu0 %v2138_v61  ;;  %v2214_v60 = vld [vmem:[#allocation5 + $0x400] ss:$8 sps:$4 sm:$0xff]  }
  0x82   :  { %1569 = vmatprep.subr.bf16.mxu1 %v2141_v62  ;;  %v2217_v61 = vld [vmem:[#allocation5 + $0x500] ss:$8 sps:$4 sm:$0xff]   ;;  %v2222_v62 = vld [vmem:[#allocation5 + $0x4f4] ss:$8 sps:$4 sm:$0xff]  }
  0x84   :  { %1529 = vmatpush2.bf16.msra.mxu0 %v2136_v63  ;;  %v2225_v63 = vld [vmem:[#allocation5 + $0x5f4] ss:$8 sps:$4 sm:$0xff]  }
  0x85   :  { %1570 = vmatpush2.bf16.msra.mxu1 %v2139_v0  ;;  %1530 = vmatprep.subr.bf16.mxu0 %v2144_v1  ;;  %v2220_v0 = vld [vmem:[#allocation5 + $0x4f0] ss:$8 sps:$4 sm:$0xff]  }
  0x86   :  { %1571 = vmatprep.subr.bf16.mxu1 %v2147_v2  ;;  %v2223_v1 = vld [vmem:[#allocation5 + $0x5f0] ss:$8 sps:$4 sm:$0xff]   ;;  %v2228_v2 = vld [vmem:[#allocation5 + $0x4e4] ss:$8 sps:$4 sm:$0xff]  }
  0x88   :  { %1531 = vmatpush2.bf16.msra.mxu0 %v2142_v3  ;;  %v2231_v3 = vld [vmem:[#allocation5 + $0x5e4] ss:$8 sps:$4 sm:$0xff]  }
  0x89   :  { %1572 = vmatpush2.bf16.msra.mxu1 %v2145_v4  ;;  %1532 = vmatprep.subr.bf16.mxu0 %v2150_v5  ;;  %v2226_v4 = vld [vmem:[#allocation5 + $0x4e0] ss:$8 sps:$4 sm:$0xff]  }
  0x8a   :  { %1573 = vmatprep.subr.bf16.mxu1 %v2153_v6  ;;  %v2229_v5 = vld [vmem:[#allocation5 + $0x5e0] ss:$8 sps:$4 sm:$0xff]   ;;  %v2234_v6 = vld [vmem:[#allocation5 + $0x4d4] ss:$8 sps:$4 sm:$0xff]  }
  0x8c   :  { %1533 = vmatpush2.bf16.msra.mxu0 %v2148_v7  ;;  %v2237_v7 = vld [vmem:[#allocation5 + $0x5d4] ss:$8 sps:$4 sm:$0xff]  }
  0x8d   :  { %1574 = vmatpush2.bf16.msra.mxu1 %v2151_v8  ;;  %1534 = vmatprep.subr.bf16.mxu0 %v2156_v9  ;;  %v2232_v8 = vld [vmem:[#allocation5 + $0x4d0] ss:$8 sps:$4 sm:$0xff]  }
  0x8e   :  { %1575 = vmatprep.subr.bf16.mxu1 %v2159_v10  ;;  %v2235_v9 = vld [vmem:[#allocation5 + $0x5d0] ss:$8 sps:$4 sm:$0xff]   ;;  %v2240_v10 = vld [vmem:[#allocation5 + $0x4c4] ss:$8 sps:$4 sm:$0xff]  }
  0x90   :  { %1535 = vmatpush2.bf16.msra.mxu0 %v2154_v11  ;;  %v2243_v11 = vld [vmem:[#allocation5 + $0x5c4] ss:$8 sps:$4 sm:$0xff]  }
  0x91   :  { %1576 = vmatpush2.bf16.msra.mxu1 %v2157_v12  ;;  %1536 = vmatprep.subr.bf16.mxu0 %v2162_v13  ;;  %v2238_v12 = vld [vmem:[#allocation5 + $0x4c0] ss:$8 sps:$4 sm:$0xff]  }
  0x92   :  { %1577 = vmatprep.subr.bf16.mxu1 %v2165_v14  ;;  %v2241_v13 = vld [vmem:[#allocation5 + $0x5c0] ss:$8 sps:$4 sm:$0xff]   ;;  %v2246_v14 = vld [vmem:[#allocation5 + $0x4b4] ss:$8 sps:$4 sm:$0xff]  }
  0x94   :  { %1537 = vmatpush2.bf16.msra.mxu0 %v2160_v15  ;;  %v2249_v15 = vld [vmem:[#allocation5 + $0x5b4] ss:$8 sps:$4 sm:$0xff]  }
  0x95   :  { %1578 = vmatpush2.bf16.msra.mxu1 %v2163_v18  ;;  %1538 = vmatprep.subr.bf16.mxu0 %v2168_v19  ;;  %v2244_v18 = vld [vmem:[#allocation5 + $0x4b0] ss:$8 sps:$4 sm:$0xff]  }
  0x96   :  { %1579 = vmatprep.subr.bf16.mxu1 %v2171_v20  ;;  %v2247_v19 = vld [vmem:[#allocation5 + $0x5b0] ss:$8 sps:$4 sm:$0xff]   ;;  %v2252_v20 = vld [vmem:[#allocation5 + $0x4a4] ss:$8 sps:$4 sm:$0xff]  }
  0x98   :  { %1539 = vmatpush2.bf16.msra.mxu0 %v2166_v21  ;;  %v2255_v21 = vld [vmem:[#allocation5 + $0x5a4] ss:$8 sps:$4 sm:$0xff]  }
  0x99   :  { %1580 = vmatpush2.bf16.msra.mxu1 %v2169_v22  ;;  %1590 = vmatprep.subr.bf16.mxu0 %v2174_v23  ;;  %v2250_v22 = vld [vmem:[#allocation5 + $0x4a0] ss:$8 sps:$4 sm:$0xff]  }
  0x9a   :  { %1631 = vmatprep.subr.bf16.mxu1 %v2177_v24  ;;  %v2253_v23 = vld [vmem:[#allocation5 + $0x5a0] ss:$8 sps:$4 sm:$0xff]   ;;  %v56_v24 = vcombine.high %v2414_v29, %v2414_v29  ;;  %v2271_v29 = vld [vmem:[#allocation5 + $0x674] ss:$8 sps:$4 sm:$0xff]  }
  0x9b   :  { %1541 = vmatmul.mubr.bf16.vlgmr.msra.gmra.mxu0 %v1745_v25  ;;  %v2258_v25 = vld [vmem:[#allocation5 + $0x494] ss:$8 sps:$4 sm:$0xff]  }
  0x9c   :  { %1582 = vmatmul.mubr.bf16.vlgmr.msra.gmra.mxu1 %v1747_v27  ;;  %1591 = vmatpush1.bf16.msra.mxu0 %v2172_v26  ;;  %v2261_v26 = vld [vmem:[#allocation5 + $0x594] ss:$8 sps:$4 sm:$0xff]   ;;  %v2256_v27 = vld [vmem:[#allocation5 + $0x490] ss:$8 sps:$4 sm:$0xff]  }
  0x9d   :  { %1632 = vmatpush1.bf16.msra.mxu1 %v2175_v28  ;;  %1592 = vmatprep.subr.bf16.mxu0 %v2180_v30  ;;  %v2259_v28 = vld [vmem:[#allocation5 + $0x590] ss:$8 sps:$4 sm:$0xff]   ;;  %v70_v30 = vrot.slane %v56_v24, %v2398_v49 }
  0x9e   :  { %1633 = vmatprep.subr.bf16.mxu1 %v2183_v31  ;;  %1622 = vmatprep.mubr.bf16.mxu0 %v1750_v37  ;;  %v2264_v31 = vld [vmem:[#allocation5 + $0x484] ss:$8 sps:$4 sm:$0xff]   ;;  %v1751_v37 = vcombine.low %v2420_v16, %v2420_v16  ;;  %v2269_v49 = vld [vmem:[#allocation5 + $0x670] ss:$8 sps:$4 sm:$0xff]   ;;  %v2278_v16 = vld [vmem:[#allocation5 + $0x640] ss:$8 sps:$4 sm:$0xff]  }
  0x9f   :  { %1663 = vmatprep.mubr.bf16.mxu1 %v1752_v38 }
  0xa0   :  { %1593 = vmatpush1.bf16.msra.mxu0 %v2178_v17  ;;  %v2262_v17 = vld [vmem:[#allocation5 + $0x480] ss:$8 sps:$4 sm:$0xff]  }
  0xa1   :  { %1634 = vmatpush1.bf16.msra.mxu1 %v2181_v34  ;;  %1594 = vmatprep.subr.bf16.mxu0 %v2186_v35  ;;  %v2265_v34 = vld [vmem:[#allocation5 + $0x580] ss:$8 sps:$4 sm:$0xff]   ;;  %v77_v35 = vunpack.c.l.u8.bf16 %v70_v30 }
  0xa2   :  { %1635 = vmatprep.subr.bf16.mxu1 %v2189_v36  ;;  %v1749_v36 = vcombine.low %v2418_v33, %v2418_v33  ;;  %v2280_v33 = vld [vmem:[#allocation5 + $0x644] ss:$8 sps:$4 sm:$0xff]  }
  0xa3   :  { %v1754_v38 = vcombine.high %v77_v35, %v77_v35 }
  0xa4   :  { %1595 = vmatpush1.bf16.msra.mxu0 %v2184_v39  ;;  %v2274_v39 = vld [vmem:[#allocation5 + $0x664] ss:$8 sps:$4 sm:$0xff]  }
  0xa5   :  { %1636 = vmatpush1.bf16.msra.mxu1 %v2187_v40  ;;  %1596 = vmatprep.subr.bf16.mxu0 %v2192_v41  ;;  %v2272_v40 = vld [vmem:[#allocation5 + $0x660] ss:$8 sps:$4 sm:$0xff]   ;;  %v2277_v41 = vld [vmem:[#allocation5 + $0x654] ss:$8 sps:$4 sm:$0xff]  }
  0xa6   :  { %1637 = vmatprep.subr.bf16.mxu1 %v2195_v42  ;;  %v2275_v42 = vld [vmem:[#allocation5 + $0x650] ss:$8 sps:$4 sm:$0xff]  }
  0xa8   :  { %1597 = vmatpush1.bf16.msra.mxu0 %v2190_v43  ;;  %v2283_v43 = vld [vmem:[#allocation5 + $0x634] ss:$8 sps:$4 sm:$0xff]  }
  0xa9   :  { %1638 = vmatpush1.bf16.msra.mxu1 %v2193_v44  ;;  %1598 = vmatprep.subr.bf16.mxu0 %v2198_v45  ;;  %v2281_v44 = vld [vmem:[#allocation5 + $0x630] ss:$8 sps:$4 sm:$0xff]   ;;  %v2286_v45 = vld [vmem:[#allocation5 + $0x624] ss:$8 sps:$4 sm:$0xff]  }
  0xaa   :  { %1639 = vmatprep.subr.bf16.mxu1 %v2201_v46  ;;  %v2284_v46 = vld [vmem:[#allocation5 + $0x620] ss:$8 sps:$4 sm:$0xff]  }
  0xac   :  { %1599 = vmatpush1.bf16.msra.mxu0 %v2196_v47  ;;  %v2289_v47 = vld [vmem:[#allocation5 + $0x614] ss:$8 sps:$4 sm:$0xff]  }
  0xad   :  { %1640 = vmatpush1.bf16.msra.mxu1 %v2199_v48  ;;  %1600 = vmatprep.subr.bf16.mxu0 %v2204_v50  ;;  %v2287_v48 = vld [vmem:[#allocation5 + $0x610] ss:$8 sps:$4 sm:$0xff]   ;;  %v2292_v50 = vld [vmem:[#allocation5 + $0x604] ss:$8 sps:$4 sm:$0xff]  }
  0xae   :  { %1641 = vmatprep.subr.bf16.mxu1 %v2207_v51  ;;  %v2290_v51 = vld [vmem:[#allocation5 + $0x600] ss:$8 sps:$4 sm:$0xff]  }
  0xb0   :  { %1601 = vmatpush1.bf16.msra.mxu0 %v2202_v52  ;;  %v2295_v52 = vld [vmem:[#allocation5 + $0x6b4] ss:$8 sps:$4 sm:$0xff]  }
  0xb1   :  { %1642 = vmatpush1.bf16.msra.mxu1 %v2205_v53  ;;  %1602 = vmatprep.subr.bf16.mxu0 %v2210_v54  ;;  %v2293_v53 = vld [vmem:[#allocation5 + $0x6b0] ss:$8 sps:$4 sm:$0xff]   ;;  %v2298_v54 = vld [vmem:[#allocation5 + $0x6a4] ss:$8 sps:$4 sm:$0xff]  }
  0xb2   :  { %1643 = vmatprep.subr.bf16.mxu1 %v2213_v55  ;;  %v2296_v55 = vld [vmem:[#allocation5 + $0x6a0] ss:$8 sps:$4 sm:$0xff]  }
  0xb4   :  { %1603 = vmatpush1.bf16.msra.mxu0 %v2208_v56  ;;  %v2301_v56 = vld [vmem:[#allocation5 + $0x694] ss:$8 sps:$4 sm:$0xff]  }
  0xb5   :  { %1644 = vmatpush1.bf16.msra.mxu1 %v2211_v57  ;;  %1604 = vmatprep.subr.bf16.mxu0 %v2216_v58  ;;  %v2299_v57 = vld [vmem:[#allocation5 + $0x690] ss:$8 sps:$4 sm:$0xff]   ;;  %v2304_v58 = vld [vmem:[#allocation5 + $0x684] ss:$8 sps:$4 sm:$0xff]  }
  0xb6   :  { %1645 = vmatprep.subr.bf16.mxu1 %v2219_v59  ;;  %v2302_v59 = vld [vmem:[#allocation5 + $0x680] ss:$8 sps:$4 sm:$0xff]  }
  0xb8   :  { %1605 = vmatpush1.bf16.msra.mxu0 %v2214_v60  ;;  %v1753_v60 = vcombine.low %v77_v35, %v77_v35 }
  0xb9   :  { %1646 = vmatpush1.bf16.msra.mxu1 %v2217_v61  ;;  %1606 = vmatprep.subr.bf16.mxu0 %v2222_v62 }
  0xba   :  { %1647 = vmatprep.subr.bf16.mxu1 %v2225_v63 }
  0xbc   :  { %1607 = vmatpush2.bf16.msra.mxu0 %v2220_v0 }
  0xbd   :  { %1648 = vmatpush2.bf16.msra.mxu1 %v2223_v1  ;;  %1608 = vmatprep.subr.bf16.mxu0 %v2228_v2 }
  0xbe   :  { %1649 = vmatprep.subr.bf16.mxu1 %v2231_v3 }
  0xc0   :  { %1609 = vmatpush2.bf16.msra.mxu0 %v2226_v4 }
  0xc1   :  { %1650 = vmatpush2.bf16.msra.mxu1 %v2229_v5  ;;  %1610 = vmatprep.subr.bf16.mxu0 %v2234_v6 }
  0xc2   :  { %1651 = vmatprep.subr.bf16.mxu1 %v2237_v7 }
  0xc4   :  { %1611 = vmatpush2.bf16.msra.mxu0 %v2232_v8 }
  0xc5   :  { %1652 = vmatpush2.bf16.msra.mxu1 %v2235_v9  ;;  %1612 = vmatprep.subr.bf16.mxu0 %v2240_v10 }
  0xc6   :  { %1653 = vmatprep.subr.bf16.mxu1 %v2243_v11 }
  0xc8   :  { %1613 = vmatpush2.bf16.msra.mxu0 %v2238_v12 }
  0xc9   :  { %1654 = vmatpush2.bf16.msra.mxu1 %v2241_v13  ;;  %1614 = vmatprep.subr.bf16.mxu0 %v2246_v14 }
  0xca   :  { %1655 = vmatprep.subr.bf16.mxu1 %v2249_v15 }
  0xcc   :  { %1615 = vmatpush2.bf16.msra.mxu0 %v2244_v18 }
  0xcd   :  { %1656 = vmatpush2.bf16.msra.mxu1 %v2247_v19  ;;  %1616 = vmatprep.subr.bf16.mxu0 %v2252_v20 }
  0xce   :  { %1657 = vmatprep.subr.bf16.mxu1 %v2255_v21 }
  0xd0   :  { %1617 = vmatpush2.bf16.msra.mxu0 %v2250_v22 }
  0xd1   :  { %1658 = vmatpush2.bf16.msra.mxu1 %v2253_v23  ;;  %1618 = vmatprep.subr.bf16.mxu0 %v2258_v25 }
  0xd2   :  { %1659 = vmatprep.subr.bf16.mxu1 %v2261_v26 }
  0xd4   :  { %1619 = vmatpush2.bf16.msra.mxu0 %v2256_v27 }
  0xd5   :  { %1660 = vmatpush2.bf16.msra.mxu1 %v2259_v28  ;;  %1620 = vmatprep.subr.bf16.mxu0 %v2264_v31 }
  0xd6   :  { %1661 = vmatprep.subr.bf16.mxu1 %v2267_v32 }
  0xd8   :  { %1621 = vmatpush2.bf16.msra.mxu0 %v2262_v17 }
  0xd9   :  { %1662 = vmatpush2.bf16.msra.mxu1 %v2265_v34  ;;  %1672 = vmatprep.subr.bf16.mxu0 %v2271_v29 }
  0xdb   :  { %1623 = vmatmul.mubr.bf16.vlgmr.msra.gmra.mxu0 %v1749_v36 }
  0xdc   :  { %1664 = vmatmul.mubr.bf16.vlgmr.msra.gmra.mxu1 %v1751_v37  ;;  %1673 = vmatpush1.bf16.msra.mxu0 %v2269_v49 }
  0xdd   :  { %1971 = vmatprep.mubr.msk.bf16.mxu0 %vm1422_vm0, %v1754_v38  ;;  %1674 = vmatprep.subr.bf16.mxu0 %v2274_v39 }
  0xe0   :  { %1675 = vmatpush1.bf16.msra.mxu0 %v2272_v40 }
  0xe1   :  { %1676 = vmatprep.subr.bf16.mxu0 %v2277_v41 }
  0xe4   :  { %1677 = vmatpush1.bf16.msra.mxu0 %v2275_v42 }
  0xe5   :  { %1678 = vmatprep.subr.bf16.mxu0 %v2280_v33 }
  0xe8   :  { %1679 = vmatpush1.bf16.msra.mxu0 %v2278_v16 }
  0xe9   :  { %1680 = vmatprep.subr.bf16.mxu0 %v2283_v43 }
  0xec   :  { %1681 = vmatpush1.bf16.msra.mxu0 %v2281_v44 }
  0xed   :  { %1682 = vmatprep.subr.bf16.mxu0 %v2286_v45 }
  0xf0   :  { %1683 = vmatpush1.bf16.msra.mxu0 %v2284_v46 }
  0xf1   :  { %1684 = vmatprep.subr.bf16.mxu0 %v2289_v47 }
  0xf4   :  { %1685 = vmatpush1.bf16.msra.mxu0 %v2287_v48 }
  0xf5   :  { %1686 = vmatprep.subr.bf16.mxu0 %v2292_v50 }
  0xf8   :  { %1687 = vmatpush1.bf16.msra.mxu0 %v2290_v51 }
  0xf9   :  { %1696 = vmatprep.subr.bf16.mxu0 %v2295_v52 }
  0xfc   :  { %1697 = vmatpush2.bf16.msra.mxu0 %v2293_v53 }
  0xfd   :  { %1698 = vmatprep.subr.bf16.mxu0 %v2298_v54 }
 0x100   :  { %1699 = vmatpush2.bf16.msra.mxu0 %v2296_v55 }
 0x101   :  { %1700 = vmatprep.subr.bf16.mxu0 %v2301_v56 }
 0x104   :  { %1701 = vmatpush2.bf16.msra.mxu0 %v2299_v57 }
 0x105   :  { %1702 = vmatprep.subr.bf16.mxu0 %v2304_v58 }
 0x108   :  { %1703 = vmatpush2.bf16.msra.mxu0 %v2302_v59 }
 0x10b   :  { %1705 = vmatmul.mubr.bf16.vlgmr.msra.gmra.mxu0 %v1753_v60 }
 0x11b   :  { %v1460_v61 = vpop.f32.mrf.mxu0 }
 0x11c   :  { %v1501_v62 = vpop.f32.mrf.mxu1 }
 0x11d   :  { %v1502_v63 = vadd.f32 %v1501_v62, %v1460_v61  ;;  %v1462_v0 = vpop.f32.mrf.mxu0 }
 0x11e   :  { %v1503_v1 = vpop.f32.mrf.mxu1 }
 0x11f   :  { %v1504_v2 = vadd.f32 %v1503_v1, %v1462_v0  ;;  %v1464_v3 = vpop.f32.mrf.mxu0 }
 0x120   :  { %v1505_v4 = vpop.f32.mrf.mxu1 }
 0x121   :  { %v1465_v5 = vpop.f32.mrf.mxu0 }
 0x122   :  { %v1506_v6 = vpop.f32.mrf.mxu1 }
 0x15b   :  { %v1542_v7 = vpop.f32.mrf.mxu0 }
 0x15c   :  { %v1583_v8 = vpop.f32.mrf.mxu1  ;;  %v1543_v9 = vadd.f32 %v1542_v7, %v1502_v63 }
 0x15d   :  { %v1544_v10 = vpop.f32.mrf.mxu0 }
 0x15e   :  { %v1585_v11 = vpop.f32.mrf.mxu1  ;;  %v1545_v12 = vadd.f32 %v1544_v10, %v1504_v2  ;;  %v1584_v13 = vadd.f32 %v1583_v8, %v1543_v9 }
 0x15f   :  { %v1546_v14 = vpop.f32.mrf.mxu0 }
 0x160   :  { %v1587_v15 = vpop.f32.mrf.mxu1  ;;  %v1586_v18 = vadd.f32 %v1585_v11, %v1545_v12 }
 0x161   :  { %v1547_v19 = vpop.f32.mrf.mxu0 }
 0x162   :  { %v1588_v20 = vpop.f32.mrf.mxu1 }
 0x19b   :  { %v1624_v21 = vpop.f32.mrf.mxu0 }
 0x19c   :  { %v1665_v22 = vpop.f32.mrf.mxu1  ;;  %v1625_v30 = vadd.f32 %v1624_v21, %v1584_v13 }
 0x19d   :  { %v1626_v23 = vpop.f32.mrf.mxu0 }
 0x19e   :  { %v1667_v24 = vpop.f32.mrf.mxu1  ;;  %v1627_v31 = vadd.f32 %v1626_v23, %v1586_v18  ;;  %v1666_v17 = vadd.f32 %v1665_v22, %v1625_v30 }
 0x19f   :  { %v1628_v25 = vpop.f32.mrf.mxu0 }
 0x1a0   :  { %v1669_v26 = vpop.f32.mrf.mxu1  ;;  %v1668_v34 = vadd.f32 %v1667_v24, %v1627_v31 }
 0x1a1   :  { %v1629_v27 = vpop.f32.mrf.mxu0 }
 0x1a2   :  { %v1670_v28 = vpop.f32.mrf.mxu1 }
 0x1cb   :  { %v1706_v32 = vpop.f32.mrf.mxu0 }
 0x1cc   :  { %v1707_v29 = vadd.f32 %v1706_v32, %v1666_v17 }
 0x1cd   :  { %v1708_v35 = vpop.f32.mrf.mxu0 }
 0x1ce   :  { %v1709_v36 = vadd.f32 %v1708_v35, %v1668_v34 }
 0x1cf   :  { %v1710_v37 = vpop.f32.mrf.mxu0 }
 0x1d0   :  { %v1715_v49 = vcombine.low %v1707_v29, %v1709_v36 }
 0x1d1   :  { %v1711_v38 = vpop.f32.mrf.mxu0 }
 0x1d2   :  { %1972 = vst.sshfl [vmem:[#allocation7] sm:$0x33 pattern:$0x76325410] %v1715_v49 }
 0x1d3   :  { %2356 = shalt.err (!%p2353_p0)
}
 0x1d4   :  { %1734 = dma.vmem_to_hbm [thread:$0]  %s1732_s1, 64, %s2438_s2, [#allocation4]  }
 0x1d5   :  { %2369 = dma.done.wait [#allocation4], 64  }
 0x1d6   :  { %2370 = vsyncadd [#allocation4], 4294967232 }
 0x1d7   :  { %1738 = vsyncpa [#allocation3], 1 }
 0x1d8   :  { %1739 = vsyncpa [#allocation6], 1 }
 0x1d9   :  { %1740 = vsyncpa [#allocation4], 1 }

// kernel: tpu_custom_call.1
= control target key start
LH: loop header
LB: loop body
LE: loop exit
PB: predicated region body
PF: predicated region fallthrough
CT: control target
= control target key end

     0   :  { %7 = vsyncpa [#allocation3], 0  ;;  %s2436_s0 = inlined_call_operand.hbm [shape: u8[2,1728], index: 0, kind: input, shape index: {}]   ;;  %s2437_s1 = inlined_call_operand.hbm [shape: bf16[1728,256], index: 1, kind: input, shape index: {}]   ;;  %s2438_s2 = inlined_call_operand.hbm [shape: f32[2,256], index: 2, kind: output, shape index: {}]  }
   0x1   :  { %8 = vsyncpa [#allocation6], 0 }
   0x2   :  { %9 = vsyncpa [#allocation4], 0  ;;  %s2371_s9 = smov [#allocation2]   ;;  %s2372_s11 = smov [#allocation5]  }
   0x3   :  { %s16_s10 = sshll.u32 %s2371_s9, 4  ;;  %s25_s12 = sshll.u32 %s2372_s11, 4  ;;  %s17_s10 = int_to_ptr.vmem [resolvable:$true] %s16_s10  ;;  %s26_s12 = int_to_ptr.vmem [resolvable:$true] %s25_s12 }
   0x4   :  { %s2313_s13 = scalar_lea.vmem %s17_s10, 224  ;;  %p2318_p1 = scmp.lt.s32.totalorder %s17_s10, %s17_s10 }
   0x5   :  { %p2314_p0 = scmp.ne.s32.totalorder %s17_s10, %s2313_s13  ;;  %p2319_p2 = scmp.lt.s32.totalorder %s2313_s13, %s2313_s13 }
   0x7   :  { %p2320_p3 = por %p2319_p2, %p2318_p1 }
   0x9   :  { %p2321_p4 = pnand %p2320_p3, %p2314_p0 }
   0xb   :  { %2324 = shalt.err (!%p2321_p4)
}
   0xc   :  { %19 = dma.hbm_to_vmem [thread:$0]  %s2436_s0, 224, %s17_s10, [#allocation3]  }
   0xd   :  { %s2333_s16 = scalar_lea.vmem %s26_s12, 27648  ;;  %p2338_p6 = scmp.lt.s32.totalorder %s26_s12, %s26_s12 }
   0xe   :  { %p2334_p5 = scmp.ne.s32.totalorder %s26_s12, %s2333_s16  ;;  %p2339_p7 = scmp.lt.s32.totalorder %s2333_s16, %s2333_s16 }
  0x10   :  { %p2340_p8 = por %p2339_p7, %p2338_p6 }
  0x12   :  { %p2341_p9 = pnand %p2340_p8, %p2334_p5 }
  0x14   :  { %2344 = shalt.err (!%p2341_p9)
}
  0x15   :  { %s2373_s17 = smov 128   ;;  %s2374_s18 = smov 8  }
  0x16   :  { %31 = dma.hbm_to_vmem [thread:$0]  %s2437_s1, 27648, %s26_s12, [#allocation6], %s2373_s17, %s2373_s17, %s2374_s18  }
  0x17   :  { %2365 = dma.done.wait [#allocation3], 224  }
  0x18   :  { %2366 = vsyncadd [#allocation3], 4294967072 }
  0x19   :  { %2367 = dma.done.wait [#allocation6], 27648  }
  0x1a   :  { %2368 = vsyncadd [#allocation6], 4294939648  ;;  %v1979_v0 = vld [vmem:[#allocation5 + $0x74] ss:$8 sps:$4 sm:$0xff]   ;;  %v1983_v2 = vld [vmem:[#allocation5 + $0x70] ss:$8 sps:$4 sm:$0xff]   ;;  %v45_v38 = vlaneseq }
  0x1b   :  { %v1981_v1 = vld [vmem:[#allocation5 + $0x174] ss:$8 sps:$4 sm:$0xff]   ;;  %1426 = vmatprep.subr.bf16.mxu0 %v1979_v0  ;;  %v1984_v3 = vld [vmem:[#allocation5 + $0x170] ss:$8 sps:$4 sm:$0xff]   ;;  %v1985_v4 = vld [vmem:[#allocation5 + $0x64] ss:$8 sps:$4 sm:$0xff]  }
  0x1c   :  { %1467 = vmatprep.subr.bf16.mxu1 %v1981_v1  ;;  %1427 = vmatpush1.bf16.msra.mxu0 %v1983_v2  ;;  %v1987_v5 = vld [vmem:[#allocation5 + $0x164] ss:$8 sps:$4 sm:$0xff]   ;;  %v1989_v6 = vld [vmem:[#allocation5 + $0x60] ss:$8 sps:$4 sm:$0xff]   ;;  %v1991_v8 = vld [vmem:[#allocation5 + $0x54] ss:$8 sps:$4 sm:$0xff]  }
  0x1d   :  { %1468 = vmatpush1.bf16.msra.mxu1 %v1984_v3  ;;  %1428 = vmatprep.subr.bf16.mxu0 %v1985_v4  ;;  %v1990_v7 = vld [vmem:[#allocation5 + $0x160] ss:$8 sps:$4 sm:$0xff]   ;;  %v1993_v9 = vld [vmem:[#allocation5 + $0x154] ss:$8 sps:$4 sm:$0xff]   ;;  %v1995_v10 = vld [vmem:[#allocation5 + $0x50] ss:$8 sps:$4 sm:$0xff]  }
  0x1e   :  { %1469 = vmatprep.subr.bf16.mxu1 %v1987_v5  ;;  %v1996_v11 = vld [vmem:[#allocation5 + $0x150] ss:$8 sps:$4 sm:$0xff]   ;;  %v1997_v12 = vld [vmem:[#allocation5 + $0x44] ss:$8 sps:$4 sm:$0xff]   ;;  %v2001_v14 = vld [vmem:[#allocation5 + $0x40] ss:$8 sps:$4 sm:$0xff]  }
  0x1f   :  { %v1999_v13 = vld [vmem:[#allocation5 + $0x144] ss:$8 sps:$4 sm:$0xff]   ;;  %v2002_v15 = vld [vmem:[#allocation5 + $0x140] ss:$8 sps:$4 sm:$0xff]   ;;  %v2003_v16 = vld [vmem:[#allocation5 + $0x34] ss:$8 sps:$4 sm:$0xff]  }
  0x20   :  { %1429 = vmatpush1.bf16.msra.mxu0 %v1989_v6  ;;  %v2005_v17 = vld [vmem:[#allocation5 + $0x134] ss:$8 sps:$4 sm:$0xff]   ;;  %v2007_v18 = vld [vmem:[#allocation5 + $0x30] ss:$8 sps:$4 sm:$0xff]   ;;  %v2009_v20 = vld [vmem:[#allocation5 + $0x24] ss:$8 sps:$4 sm:$0xff]  }
  0x21   :  { %1470 = vmatpush1.bf16.msra.mxu1 %v1990_v7  ;;  %1430 = vmatprep.subr.bf16.mxu0 %v1991_v8  ;;  %v2008_v19 = vld [vmem:[#allocation5 + $0x130] ss:$8 sps:$4 sm:$0xff]   ;;  %v2011_v21 = vld [vmem:[#allocation5 + $0x124] ss:$8 sps:$4 sm:$0xff]   ;;  %v2013_v22 = vld [vmem:[#allocation5 + $0x20] ss:$8 sps:$4 sm:$0xff]  }
  0x22   :  { %1471 = vmatprep.subr.bf16.mxu1 %v1993_v9  ;;  %v2014_v23 = vld [vmem:[#allocation5 + $0x120] ss:$8 sps:$4 sm:$0xff]   ;;  %v2015_v24 = vld [vmem:[#allocation5 + $0x14] ss:$8 sps:$4 sm:$0xff]   ;;  %v2019_v26 = vld [vmem:[#allocation5 + $0x10] ss:$8 sps:$4 sm:$0xff]  }
  0x23   :  { %v2017_v25 = vld [vmem:[#allocation5 + $0x114] ss:$8 sps:$4 sm:$0xff]   ;;  %v2020_v27 = vld [vmem:[#allocation5 + $0x110] ss:$8 sps:$4 sm:$0xff]   ;;  %v2021_v28 = vld [vmem:[#allocation5 + $0x4] ss:$8 sps:$4 sm:$0xff]  }
  0x24   :  { %1431 = vmatpush1.bf16.msra.mxu0 %v1995_v10  ;;  %v2023_v29 = vld [vmem:[#allocation5 + $0x104] ss:$8 sps:$4 sm:$0xff]   ;;  %v2025_v30 = vld [vmem:[#allocation5] ss:$8 sps:$4 sm:$0xff]   ;;  %v2027_v32 = vld [vmem:[#allocation5 + $0xf4] ss:$8 sps:$4 sm:$0xff]  }
  0x25   :  { %1472 = vmatpush1.bf16.msra.mxu1 %v1996_v11  ;;  %1432 = vmatprep.subr.bf16.mxu0 %v1997_v12  ;;  %v2026_v31 = vld [vmem:[#allocation5 + $0x100] ss:$8 sps:$4 sm:$0xff]   ;;  %v2029_v33 = vld [vmem:[#allocation5 + $0x1f4] ss:$8 sps:$4 sm:$0xff]   ;;  %v2031_v34 = vld [vmem:[#allocation5 + $0xf0] ss:$8 sps:$4 sm:$0xff]  }
  0x26   :  { %1473 = vmatprep.subr.bf16.mxu1 %v1999_v13  ;;  %v2032_v35 = vld [vmem:[#allocation5 + $0x1f0] ss:$8 sps:$4 sm:$0xff]   ;;  %v2375_v36 = vmov 1935823168   ;;  %v2033_v39 = vld [vmem:[#allocation5 + $0xe4] ss:$8 sps:$4 sm:$0xff]  }
  0x27   :  { %v43_v37 = vunpack.c.l.s4 %v2375_v36  ;;  %v2035_v40 = vld [vmem:[#allocation5 + $0x1e4] ss:$8 sps:$4 sm:$0xff]   ;;  %v2037_v41 = vld [vmem:[#allocation5 + $0xe0] ss:$8 sps:$4 sm:$0xff]   ;;  %v46_v43 = vshrl.u32 %v45_v38, 7  ;;  %v39_v52 = vld [vmem:[#allocation2] sm:$0xff] }
  0x28   :  { %1433 = vmatpush1.bf16.msra.mxu0 %v2001_v14  ;;  %v2038_v44 = vld [vmem:[#allocation5 + $0x1e0] ss:$8 sps:$4 sm:$0xff]   ;;  %v2039_v45 = vld [vmem:[#allocation5 + $0xd4] ss:$8 sps:$4 sm:$0xff]   ;;  %v2043_v47 = vld [vmem:[#allocation5 + $0xd0] ss:$8 sps:$4 sm:$0xff]   ;;  %v41_v6 = vcombine.high %v39_v52, %v39_v52 }
  0x29   :  { %1474 = vmatpush1.bf16.msra.mxu1 %v2002_v15  ;;  %1434 = vmatprep.subr.bf16.mxu0 %v2003_v16  ;;  %v44_v42 = vunpack.c.0.s8 %v43_v37  ;;  %v2041_v46 = vld [vmem:[#allocation5 + $0x1d4] ss:$8 sps:$4 sm:$0xff]   ;;  %v2044_v48 = vld [vmem:[#allocation5 + $0x1d0] ss:$8 sps:$4 sm:$0xff]   ;;  %v2045_v50 = vld [vmem:[#allocation5 + $0xc4] ss:$8 sps:$4 sm:$0xff]  }
  0x2a   :  { %1475 = vmatprep.subr.bf16.mxu1 %v2005_v17  ;;  %v2047_v51 = vld [vmem:[#allocation5 + $0x1c4] ss:$8 sps:$4 sm:$0xff]   ;;  %v2049_v53 = vld [vmem:[#allocation5 + $0xc0] ss:$8 sps:$4 sm:$0xff]   ;;  %v2051_v56 = vld [vmem:[#allocation5 + $0xb4] ss:$8 sps:$4 sm:$0xff]  }
  0x2b   :  { %v2398_v49 = vsub.s32 %v44_v42, %v46_v43  ;;  %v2050_v55 = vld [vmem:[#allocation5 + $0x1c0] ss:$8 sps:$4 sm:$0xff]   ;;  %v2053_v57 = vld [vmem:[#allocation5 + $0x1b4] ss:$8 sps:$4 sm:$0xff]   ;;  %v2055_v60 = vld [vmem:[#allocation5 + $0xb0] ss:$8 sps:$4 sm:$0xff]  }
  0x2c   :  { %1435 = vmatpush1.bf16.msra.mxu0 %v2007_v18  ;;  %v2056_v63 = vld [vmem:[#allocation5 + $0x1b0] ss:$8 sps:$4 sm:$0xff]   ;;  %v2057_v0 = vld [vmem:[#allocation5 + $0xa4] ss:$8 sps:$4 sm:$0xff]   ;;  %v2061_v2 = vld [vmem:[#allocation5 + $0xa0] ss:$8 sps:$4 sm:$0xff]  }
  0x2d   :  { %1476 = vmatpush1.bf16.msra.mxu1 %v2008_v19  ;;  %1436 = vmatprep.subr.bf16.mxu0 %v2009_v20  ;;  %v48_v54 = vrot.slane %v39_v52, %v2398_v49  ;;  %v2059_v1 = vld [vmem:[#allocation5 + $0x1a4] ss:$8 sps:$4 sm:$0xff]   ;;  %v2062_v3 = vld [vmem:[#allocation5 + $0x1a0] ss:$8 sps:$4 sm:$0xff]   ;;  %v2063_v4 = vld [vmem:[#allocation5 + $0x94] ss:$8 sps:$4 sm:$0xff]   ;;  %v55_v11 = vrot.slane %v41_v6, %v2398_v49 }
  0x2e   :  { %1477 = vmatprep.subr.bf16.mxu1 %v2011_v21  ;;  %v2065_v5 = vld [vmem:[#allocation5 + $0x194] ss:$8 sps:$4 sm:$0xff]   ;;  %v2067_v7 = vld [vmem:[#allocation5 + $0x90] ss:$8 sps:$4 sm:$0xff]   ;;  %v2069_v9 = vld [vmem:[#allocation5 + $0x84] ss:$8 sps:$4 sm:$0xff]  }
  0x2f   :  { %v71_v58 = vunpack.c.l.u8.bf16 %v48_v54  ;;  %v72_v59 = vunpack.c.h.u8.bf16 %v48_v54  ;;  %v2068_v8 = vld [vmem:[#allocation5 + $0x190] ss:$8 sps:$4 sm:$0xff]   ;;  %v2071_v10 = vld [vmem:[#allocation5 + $0x184] ss:$8 sps:$4 sm:$0xff]   ;;  %v2073_v12 = vld [vmem:[#allocation5 + $0x80] ss:$8 sps:$4 sm:$0xff]   ;;  %v2402_v16 = vunpack.c.l.u8.bf16 %v55_v11  ;;  %v2404_v17 = vunpack.c.h.u8.bf16 %v55_v11 }
  0x30   :  { %1437 = vmatpush1.bf16.msra.mxu0 %v2013_v22  ;;  %v2074_v13 = vld [vmem:[#allocation5 + $0x180] ss:$8 sps:$4 sm:$0xff]   ;;  %v2078_v14 = vld [vmem:[#allocation5 + $0x274] ss:$8 sps:$4 sm:$0xff]   ;;  %v2076_v20 = vld [vmem:[#allocation5 + $0x270] ss:$8 sps:$4 sm:$0xff]  }
  0x31   :  { %1478 = vmatpush1.bf16.msra.mxu1 %v2014_v23  ;;  %1438 = vmatprep.subr.bf16.mxu0 %v2015_v24  ;;  %v1742_v61 = vcombine.high %v71_v58, %v71_v58  ;;  %v1744_v62 = vcombine.high %v72_v59, %v72_v59  ;;  %v2081_v15 = vld [vmem:[#allocation5 + $0x374] ss:$8 sps:$4 sm:$0xff]   ;;  %v1741_v18 = vcombine.low %v71_v58, %v71_v58  ;;  %v2079_v21 = vld [vmem:[#allocation5 + $0x370] ss:$8 sps:$4 sm:$0xff]   ;;  %v2084_v22 = vld [vmem:[#allocation5 + $0x264] ss:$8 sps:$4 sm:$0xff]  }
  0x32   :  { %1479 = vmatprep.subr.bf16.mxu1 %v2017_v25  ;;  %v1743_v19 = vcombine.low %v72_v59, %v72_v59  ;;  %v2087_v23 = vld [vmem:[#allocation5 + $0x364] ss:$8 sps:$4 sm:$0xff]   ;;  %v1746_v24 = vcombine.high %v2402_v16, %v2402_v16  ;;  %v1748_v25 = vcombine.high %v2404_v17, %v2404_v17  ;;  %v2102_v36 = vld [vmem:[#allocation5 + $0x234] ss:$8 sps:$4 sm:$0xff]   ;;  %v2100_v38 = vld [vmem:[#allocation5 + $0x230] ss:$8 sps:$4 sm:$0xff]  }
  0x33   :  { %1458 = vmatprep.mubr.bf16.mxu0 %v1742_v61  ;;  %1499 = vmatprep.mubr.bf16.mxu1 %v1744_v62  ;;  %v2105_v37 = vld [vmem:[#allocation5 + $0x334] ss:$8 sps:$4 sm:$0xff]   ;;  %v2106_v42 = vld [vmem:[#allocation5 + $0x220] ss:$8 sps:$4 sm:$0xff]   ;;  %v2135_v58 = vld [vmem:[#allocation5 + $0x3e4] ss:$8 sps:$4 sm:$0xff]  }
  0x34   :  { %1439 = vmatpush1.bf16.msra.mxu0 %v2019_v26  ;;  %v2082_v26 = vld [vmem:[#allocation5 + $0x260] ss:$8 sps:$4 sm:$0xff]   ;;  %v2129_v54 = vld [vmem:[#allocation5 + $0x3f4] ss:$8 sps:$4 sm:$0xff]   ;;  %vm1422_vm0 = vcmask 523264   ;;  %s2376_s0 = smov [#allocation7]  }
  0x35   :  { %1480 = vmatpush1.bf16.msra.mxu1 %v2020_v27  ;;  %1440 = vmatprep.subr.bf16.mxu0 %v2021_v28  ;;  %v2085_v27 = vld [vmem:[#allocation5 + $0x360] ss:$8 sps:$4 sm:$0xff]   ;;  %v2090_v28 = vld [vmem:[#allocation5 + $0x254] ss:$8 sps:$4 sm:$0xff]   ;;  %s1731_s1 = sshll.u32 %s2376_s0, 4  ;;  %s1732_s1 = int_to_ptr.vmem [resolvable:$true] %s1731_s1 }
  0x36   :  { %1481 = vmatprep.subr.bf16.mxu1 %v2023_v29  ;;  %v2093_v29 = vld [vmem:[#allocation5 + $0x354] ss:$8 sps:$4 sm:$0xff]   ;;  %v2109_v43 = vld [vmem:[#allocation5 + $0x320] ss:$8 sps:$4 sm:$0xff]   ;;  %s2345_s21 = scalar_lea.vmem %s1732_s1, 64  ;;  %p2350_p11 = scmp.lt.s32.totalorder %s1732_s1, %s1732_s1 }
  0x37   :  { %v2121_v52 = vld [vmem:[#allocation5 + $0x300] ss:$8 sps:$4 sm:$0xff]   ;;  %v2138_v61 = vld [vmem:[#allocation5 + $0x2d4] ss:$8 sps:$4 sm:$0xff]   ;;  %p2346_p10 = scmp.ne.s32.totalorder %s1732_s1, %s2345_s21  ;;  %p2351_p12 = scmp.lt.s32.totalorder %s2345_s21, %s2345_s21 }
  0x38   :  { %1441 = vmatpush1.bf16.msra.mxu0 %v2025_v30  ;;  %v2088_v30 = vld [vmem:[#allocation5 + $0x250] ss:$8 sps:$4 sm:$0xff]   ;;  %v2130_v59 = vld [vmem:[#allocation5 + $0x2e0] ss:$8 sps:$4 sm:$0xff]   ;;  %v2141_v62 = vld [vmem:[#allocation5 + $0x3d4] ss:$8 sps:$4 sm:$0xff]  }
  0x39   :  { %1482 = vmatpush1.bf16.msra.mxu1 %v2026_v31  ;;  %1442 = vmatprep.subr.bf16.mxu0 %v2027_v32  ;;  %v2091_v31 = vld [vmem:[#allocation5 + $0x350] ss:$8 sps:$4 sm:$0xff]   ;;  %v2096_v32 = vld [vmem:[#allocation5 + $0x244] ss:$8 sps:$4 sm:$0xff]   ;;  %v2153_v6 = vld [vmem:[#allocation5 + $0x3b4] ss:$8 sps:$4 sm:$0xff]   ;;  %p2352_p13 = por %p2351_p12, %p2350_p11 }
  0x3a   :  { %1483 = vmatprep.subr.bf16.mxu1 %v2029_v33  ;;  %v2099_v33 = vld [vmem:[#allocation5 + $0x344] ss:$8 sps:$4 sm:$0xff]   ;;  %v2154_v11 = vld [vmem:[#allocation5 + $0x2a0] ss:$8 sps:$4 sm:$0xff]  }
  0x3b   :  { %p2353_p0 = pnand %p2352_p13, %p2346_p10 }
  0x3c   :  { %1443 = vmatpush2.bf16.msra.mxu0 %v2031_v34  ;;  %v2094_v34 = vld [vmem:[#allocation5 + $0x240] ss:$8 sps:$4 sm:$0xff]  }
  0x3d   :  { %1484 = vmatpush2.bf16.msra.mxu1 %v2032_v35  ;;  %1444 = vmatprep.subr.bf16.mxu0 %v2033_v39  ;;  %v2097_v35 = vld [vmem:[#allocation5 + $0x340] ss:$8 sps:$4 sm:$0xff]   ;;  %v2103_v39 = vld [vmem:[#allocation5 + $0x330] ss:$8 sps:$4 sm:$0xff]  }
  0x3e   :  { %1485 = vmatprep.subr.bf16.mxu1 %v2035_v40  ;;  %v2108_v40 = vld [vmem:[#allocation5 + $0x224] ss:$8 sps:$4 sm:$0xff]  }
  0x40   :  { %1445 = vmatpush2.bf16.msra.mxu0 %v2037_v41  ;;  %v2111_v41 = vld [vmem:[#allocation5 + $0x324] ss:$8 sps:$4 sm:$0xff]  }
  0x41   :  { %1486 = vmatpush2.bf16.msra.mxu1 %v2038_v44  ;;  %1446 = vmatprep.subr.bf16.mxu0 %v2039_v45  ;;  %v2114_v44 = vld [vmem:[#allocation5 + $0x214] ss:$8 sps:$4 sm:$0xff]  }
  0x42   :  { %1487 = vmatprep.subr.bf16.mxu1 %v2041_v46  ;;  %v2117_v45 = vld [vmem:[#allocation5 + $0x314] ss:$8 sps:$4 sm:$0xff]   ;;  %v2112_v46 = vld [vmem:[#allocation5 + $0x210] ss:$8 sps:$4 sm:$0xff]  }
  0x44   :  { %1447 = vmatpush2.bf16.msra.mxu0 %v2043_v47  ;;  %v2115_v47 = vld [vmem:[#allocation5 + $0x310] ss:$8 sps:$4 sm:$0xff]  }
  0x45   :  { %1488 = vmatpush2.bf16.msra.mxu1 %v2044_v48  ;;  %1448 = vmatprep.subr.bf16.mxu0 %v2045_v50  ;;  %v2120_v48 = vld [vmem:[#allocation5 + $0x204] ss:$8 sps:$4 sm:$0xff]  }
  0x46   :  { %1489 = vmatprep.subr.bf16.mxu1 %v2047_v51  ;;  %v2123_v50 = vld [vmem:[#allocation5 + $0x304] ss:$8 sps:$4 sm:$0xff]   ;;  %v2118_v51 = vld [vmem:[#allocation5 + $0x200] ss:$8 sps:$4 sm:$0xff]  }
  0x48   :  { %1449 = vmatpush2.bf16.msra.mxu0 %v2049_v53  ;;  %v2126_v53 = vld [vmem:[#allocation5 + $0x2f4] ss:$8 sps:$4 sm:$0xff]  }
  0x49   :  { %1490 = vmatpush2.bf16.msra.mxu1 %v2050_v55  ;;  %1450 = vmatprep.subr.bf16.mxu0 %v2051_v56  ;;  %v2124_v55 = vld [vmem:[#allocation5 + $0x2f0] ss:$8 sps:$4 sm:$0xff]  }
  0x4a   :  { %1491 = vmatprep.subr.bf16.mxu1 %v2053_v57  ;;  %v2127_v56 = vld [vmem:[#allocation5 + $0x3f0] ss:$8 sps:$4 sm:$0xff]   ;;  %v2132_v57 = vld [vmem:[#allocation5 + $0x2e4] ss:$8 sps:$4 sm:$0xff]  }
  0x4c   :  { %1451 = vmatpush2.bf16.msra.mxu0 %v2055_v60  ;;  %v2133_v60 = vld [vmem:[#allocation5 + $0x3e0] ss:$8 sps:$4 sm:$0xff]  }
  0x4d   :  { %1492 = vmatpush2.bf16.msra.mxu1 %v2056_v63  ;;  %1452 = vmatprep.subr.bf16.mxu0 %v2057_v0  ;;  %v2136_v63 = vld [vmem:[#allocation5 + $0x2d0] ss:$8 sps:$4 sm:$0xff]  }
  0x4e   :  { %1493 = vmatprep.subr.bf16.mxu1 %v2059_v1  ;;  %v2139_v0 = vld [vmem:[#allocation5 + $0x3d0] ss:$8 sps:$4 sm:$0xff]   ;;  %v2144_v1 = vld [vmem:[#allocation5 + $0x2c4] ss:$8 sps:$4 sm:$0xff]  }
  0x50   :  { %1453 = vmatpush2.bf16.msra.mxu0 %v2061_v2  ;;  %v2147_v2 = vld [vmem:[#allocation5 + $0x3c4] ss:$8 sps:$4 sm:$0xff]  }
  0x51   :  { %1494 = vmatpush2.bf16.msra.mxu1 %v2062_v3  ;;  %1454 = vmatprep.subr.bf16.mxu0 %v2063_v4  ;;  %v2142_v3 = vld [vmem:[#allocation5 + $0x2c0] ss:$8 sps:$4 sm:$0xff]  }
  0x52   :  { %1495 = vmatprep.subr.bf16.mxu1 %v2065_v5  ;;  %v2145_v4 = vld [vmem:[#allocation5 + $0x3c0] ss:$8 sps:$4 sm:$0xff]   ;;  %v2150_v5 = vld [vmem:[#allocation5 + $0x2b4] ss:$8 sps:$4 sm:$0xff]  }
  0x54   :  { %1455 = vmatpush2.bf16.msra.mxu0 %v2067_v7  ;;  %v2148_v7 = vld [vmem:[#allocation5 + $0x2b0] ss:$8 sps:$4 sm:$0xff]  }
  0x55   :  { %1496 = vmatpush2.bf16.msra.mxu1 %v2068_v8  ;;  %1456 = vmatprep.subr.bf16.mxu0 %v2069_v9  ;;  %v2151_v8 = vld [vmem:[#allocation5 + $0x3b0] ss:$8 sps:$4 sm:$0xff]   ;;  %v2156_v9 = vld [vmem:[#allocation5 + $0x2a4] ss:$8 sps:$4 sm:$0xff]  }
  0x56   :  { %1497 = vmatprep.subr.bf16.mxu1 %v2071_v10  ;;  %v2159_v10 = vld [vmem:[#allocation5 + $0x3a4] ss:$8 sps:$4 sm:$0xff]  }
  0x58   :  { %1457 = vmatpush2.bf16.msra.mxu0 %v2073_v12  ;;  %v2157_v12 = vld [vmem:[#allocation5 + $0x3a0] ss:$8 sps:$4 sm:$0xff]  }
  0x59   :  { %1498 = vmatpush2.bf16.msra.mxu1 %v2074_v13  ;;  %1508 = vmatprep.subr.bf16.mxu0 %v2078_v14  ;;  %v2162_v13 = vld [vmem:[#allocation5 + $0x294] ss:$8 sps:$4 sm:$0xff]  }
  0x5a   :  { %1549 = vmatprep.subr.bf16.mxu1 %v2081_v15  ;;  %v2165_v14 = vld [vmem:[#allocation5 + $0x394] ss:$8 sps:$4 sm:$0xff]   ;;  %v2160_v15 = vld [vmem:[#allocation5 + $0x290] ss:$8 sps:$4 sm:$0xff]  }
  0x5b   :  { %1459 = vmatmul.mubr.bf16.vlgmr.msra.gmra.mxu0 %v1741_v18  ;;  %v2163_v18 = vld [vmem:[#allocation5 + $0x390] ss:$8 sps:$4 sm:$0xff]  }
  0x5c   :  { %1500 = vmatmul.mubr.bf16.vlgmr.msra.gmra.mxu1 %v1743_v19  ;;  %1509 = vmatpush1.bf16.msra.mxu0 %v2076_v20  ;;  %v2168_v19 = vld [vmem:[#allocation5 + $0x284] ss:$8 sps:$4 sm:$0xff]  }
  0x5d   :  { %1550 = vmatpush1.bf16.msra.mxu1 %v2079_v21  ;;  %1510 = vmatprep.subr.bf16.mxu0 %v2084_v22  ;;  %v2171_v20 = vld [vmem:[#allocation5 + $0x384] ss:$8 sps:$4 sm:$0xff]   ;;  %v2166_v21 = vld [vmem:[#allocation5 + $0x280] ss:$8 sps:$4 sm:$0xff]  }
  0x5e   :  { %1551 = vmatprep.subr.bf16.mxu1 %v2087_v23  ;;  %1540 = vmatprep.mubr.bf16.mxu0 %v1746_v24  ;;  %v2169_v22 = vld [vmem:[#allocation5 + $0x380] ss:$8 sps:$4 sm:$0xff]   ;;  %v2174_v23 = vld [vmem:[#allocation5 + $0x474] ss:$8 sps:$4 sm:$0xff]  }
  0x5f   :  { %1581 = vmatprep.mubr.bf16.mxu1 %v1748_v25  ;;  %v2177_v24 = vld [vmem:[#allocation5 + $0x574] ss:$8 sps:$4 sm:$0xff]   ;;  %v1745_v25 = vcombine.low %v2402_v16, %v2402_v16 }
  0x60   :  { %1511 = vmatpush1.bf16.msra.mxu0 %v2082_v26  ;;  %v2172_v26 = vld [vmem:[#allocation5 + $0x470] ss:$8 sps:$4 sm:$0xff]  }
  0x61   :  { %1552 = vmatpush1.bf16.msra.mxu1 %v2085_v27  ;;  %1512 = vmatprep.subr.bf16.mxu0 %v2090_v28  ;;  %v1747_v27 = vcombine.low %v2404_v17, %v2404_v17  ;;  %v2175_v28 = vld [vmem:[#allocation5 + $0x570] ss:$8 sps:$4 sm:$0xff]   ;;  %v2178_v17 = vld [vmem:[#allocation5 + $0x460] ss:$8 sps:$4 sm:$0xff]  }
  0x62   :  { %1553 = vmatprep.subr.bf16.mxu1 %v2093_v29  ;;  %v2414_v29 = vld [vmem:[#allocation2 + $0x8] sm:$0x3f] }
  0x64   :  { %1513 = vmatpush1.bf16.msra.mxu0 %v2088_v30  ;;  %v2180_v30 = vld [vmem:[#allocation5 + $0x464] ss:$8 sps:$4 sm:$0xff]  }
  0x65   :  { %1554 = vmatpush1.bf16.msra.mxu1 %v2091_v31  ;;  %1514 = vmatprep.subr.bf16.mxu0 %v2096_v32  ;;  %v2183_v31 = vld [vmem:[#allocation5 + $0x564] ss:$8 sps:$4 sm:$0xff]   ;;  %v63_v32 = vrot.slane %v2414_v29, %v2398_v49 }
  0x66   :  { %1555 = vmatprep.subr.bf16.mxu1 %v2099_v33 }
  0x67   :  { %v2418_v33 = vunpack.c.l.u8.bf16 %v63_v32  ;;  %v2420_v16 = vunpack.c.h.u8.bf16 %v63_v32  ;;  %v2267_v32 = vld [vmem:[#allocation5 + $0x584] ss:$8 sps:$4 sm:$0xff]  }
  0x68   :  { %1515 = vmatpush1.bf16.msra.mxu0 %v2094_v34  ;;  %v2181_v34 = vld [vmem:[#allocation5 + $0x560] ss:$8 sps:$4 sm:$0xff]  }
  0x69   :  { %1556 = vmatpush1.bf16.msra.mxu1 %v2097_v35  ;;  %1516 = vmatprep.subr.bf16.mxu0 %v2102_v36  ;;  %v2186_v35 = vld [vmem:[#allocation5 + $0x454] ss:$8 sps:$4 sm:$0xff]  }
  0x6a   :  { %1557 = vmatprep.subr.bf16.mxu1 %v2105_v37  ;;  %v2189_v36 = vld [vmem:[#allocation5 + $0x554] ss:$8 sps:$4 sm:$0xff]   ;;  %v1750_v37 = vcombine.high %v2418_v33, %v2418_v33 }
  0x6c   :  { %1517 = vmatpush1.bf16.msra.mxu0 %v2100_v38  ;;  %v1752_v38 = vcombine.high %v2420_v16, %v2420_v16 }
  0x6d   :  { %1558 = vmatpush1.bf16.msra.mxu1 %v2103_v39  ;;  %1518 = vmatprep.subr.bf16.mxu0 %v2108_v40  ;;  %v2184_v39 = vld [vmem:[#allocation5 + $0x450] ss:$8 sps:$4 sm:$0xff]  }
  0x6e   :  { %1559 = vmatprep.subr.bf16.mxu1 %v2111_v41  ;;  %v2187_v40 = vld [vmem:[#allocation5 + $0x550] ss:$8 sps:$4 sm:$0xff]   ;;  %v2192_v41 = vld [vmem:[#allocation5 + $0x444] ss:$8 sps:$4 sm:$0xff]  }
  0x70   :  { %1519 = vmatpush1.bf16.msra.mxu0 %v2106_v42  ;;  %v2195_v42 = vld [vmem:[#allocation5 + $0x544] ss:$8 sps:$4 sm:$0xff]  }
  0x71   :  { %1560 = vmatpush1.bf16.msra.mxu1 %v2109_v43  ;;  %1520 = vmatprep.subr.bf16.mxu0 %v2114_v44  ;;  %v2190_v43 = vld [vmem:[#allocation5 + $0x440] ss:$8 sps:$4 sm:$0xff]  }
  0x72   :  { %1561 = vmatprep.subr.bf16.mxu1 %v2117_v45  ;;  %v2193_v44 = vld [vmem:[#allocation5 + $0x540] ss:$8 sps:$4 sm:$0xff]   ;;  %v2198_v45 = vld [vmem:[#allocation5 + $0x434] ss:$8 sps:$4 sm:$0xff]  }
  0x74   :  { %1521 = vmatpush1.bf16.msra.mxu0 %v2112_v46  ;;  %v2201_v46 = vld [vmem:[#allocation5 + $0x534] ss:$8 sps:$4 sm:$0xff]  }
  0x75   :  { %1562 = vmatpush1.bf16.msra.mxu1 %v2115_v47  ;;  %1522 = vmatprep.subr.bf16.mxu0 %v2120_v48  ;;  %v2196_v47 = vld [vmem:[#allocation5 + $0x430] ss:$8 sps:$4 sm:$0xff]  }
  0x76   :  { %1563 = vmatprep.subr.bf16.mxu1 %v2123_v50  ;;  %v2199_v48 = vld [vmem:[#allocation5 + $0x530] ss:$8 sps:$4 sm:$0xff]   ;;  %v2204_v50 = vld [vmem:[#allocation5 + $0x424] ss:$8 sps:$4 sm:$0xff]  }
  0x78   :  { %1523 = vmatpush1.bf16.msra.mxu0 %v2118_v51  ;;  %v2207_v51 = vld [vmem:[#allocation5 + $0x524] ss:$8 sps:$4 sm:$0xff]  }
  0x79   :  { %1564 = vmatpush1.bf16.msra.mxu1 %v2121_v52  ;;  %1524 = vmatprep.subr.bf16.mxu0 %v2126_v53  ;;  %v2202_v52 = vld [vmem:[#allocation5 + $0x420] ss:$8 sps:$4 sm:$0xff]  }
  0x7a   :  { %1565 = vmatprep.subr.bf16.mxu1 %v2129_v54  ;;  %v2205_v53 = vld [vmem:[#allocation5 + $0x520] ss:$8 sps:$4 sm:$0xff]   ;;  %v2210_v54 = vld [vmem:[#allocation5 + $0x414] ss:$8 sps:$4 sm:$0xff]  }
  0x7c   :  { %1525 = vmatpush2.bf16.msra.mxu0 %v2124_v55  ;;  %v2213_v55 = vld [vmem:[#allocation5 + $0x514] ss:$8 sps:$4 sm:$0xff]  }
  0x7d   :  { %1566 = vmatpush2.bf16.msra.mxu1 %v2127_v56  ;;  %1526 = vmatprep.subr.bf16.mxu0 %v2132_v57  ;;  %v2208_v56 = vld [vmem:[#allocation5 + $0x410] ss:$8 sps:$4 sm:$0xff]  }
  0x7e   :  { %1567 = vmatprep.subr.bf16.mxu1 %v2135_v58  ;;  %v2211_v57 = vld [vmem:[#allocation5 + $0x510] ss:$8 sps:$4 sm:$0xff]   ;;  %v2216_v58 = vld [vmem:[#allocation5 + $0x404] ss:$8 sps:$4 sm:$0xff]  }
  0x80   :  { %1527 = vmatpush2.bf16.msra.mxu0 %v2130_v59  ;;  %v2219_v59 = vld [vmem:[#allocation5 + $0x504] ss:$8 sps:$4 sm:$0xff]  }
  0x81   :  { %1568 = vmatpush2.bf16.msra.mxu1 %v2133_v60  ;;  %1528 = vmatprep.subr.bf16.mxu0 %v2138_v61  ;;  %v2214_v60 = vld [vmem:[#allocation5 + $0x400] ss:$8 sps:$4 sm:$0xff]  }
  0x82   :  { %1569 = vmatprep.subr.bf16.mxu1 %v2141_v62  ;;  %v2217_v61 = vld [vmem:[#allocation5 + $0x500] ss:$8 sps:$4 sm:$0xff]   ;;  %v2222_v62 = vld [vmem:[#allocation5 + $0x4f4] ss:$8 sps:$4 sm:$0xff]  }
  0x84   :  { %1529 = vmatpush2.bf16.msra.mxu0 %v2136_v63  ;;  %v2225_v63 = vld [vmem:[#allocation5 + $0x5f4] ss:$8 sps:$4 sm:$0xff]  }
  0x85   :  { %1570 = vmatpush2.bf16.msra.mxu1 %v2139_v0  ;;  %1530 = vmatprep.subr.bf16.mxu0 %v2144_v1  ;;  %v2220_v0 = vld [vmem:[#allocation5 + $0x4f0] ss:$8 sps:$4 sm:$0xff]  }
  0x86   :  { %1571 = vmatprep.subr.bf16.mxu1 %v2147_v2  ;;  %v2223_v1 = vld [vmem:[#allocation5 + $0x5f0] ss:$8 sps:$4 sm:$0xff]   ;;  %v2228_v2 = vld [vmem:[#allocation5 + $0x4e4] ss:$8 sps:$4 sm:$0xff]  }
  0x88   :  { %1531 = vmatpush2.bf16.msra.mxu0 %v2142_v3  ;;  %v2231_v3 = vld [vmem:[#allocation5 + $0x5e4] ss:$8 sps:$4 sm:$0xff]  }
  0x89   :  { %1572 = vmatpush2.bf16.msra.mxu1 %v2145_v4  ;;  %1532 = vmatprep.subr.bf16.mxu0 %v2150_v5  ;;  %v2226_v4 = vld [vmem:[#allocation5 + $0x4e0] ss:$8 sps:$4 sm:$0xff]  }
  0x8a   :  { %1573 = vmatprep.subr.bf16.mxu1 %v2153_v6  ;;  %v2229_v5 = vld [vmem:[#allocation5 + $0x5e0] ss:$8 sps:$4 sm:$0xff]   ;;  %v2234_v6 = vld [vmem:[#allocation5 + $0x4d4] ss:$8 sps:$4 sm:$0xff]  }
  0x8c   :  { %1533 = vmatpush2.bf16.msra.mxu0 %v2148_v7  ;;  %v2237_v7 = vld [vmem:[#allocation5 + $0x5d4] ss:$8 sps:$4 sm:$0xff]  }
  0x8d   :  { %1574 = vmatpush2.bf16.msra.mxu1 %v2151_v8  ;;  %1534 = vmatprep.subr.bf16.mxu0 %v2156_v9  ;;  %v2232_v8 = vld [vmem:[#allocation5 + $0x4d0] ss:$8 sps:$4 sm:$0xff]  }
  0x8e   :  { %1575 = vmatprep.subr.bf16.mxu1 %v2159_v10  ;;  %v2235_v9 = vld [vmem:[#allocation5 + $0x5d0] ss:$8 sps:$4 sm:$0xff]   ;;  %v2240_v10 = vld [vmem:[#allocation5 + $0x4c4] ss:$8 sps:$4 sm:$0xff]  }
  0x90   :  { %1535 = vmatpush2.bf16.msra.mxu0 %v2154_v11  ;;  %v2243_v11 = vld [vmem:[#allocation5 + $0x5c4] ss:$8 sps:$4 sm:$0xff]  }
  0x91   :  { %1576 = vmatpush2.bf16.msra.mxu1 %v2157_v12  ;;  %1536 = vmatprep.subr.bf16.mxu0 %v2162_v13  ;;  %v2238_v12 = vld [vmem:[#allocation5 + $0x4c0] ss:$8 sps:$4 sm:$0xff]  }
  0x92   :  { %1577 = vmatprep.subr.bf16.mxu1 %v2165_v14  ;;  %v2241_v13 = vld [vmem:[#allocation5 + $0x5c0] ss:$8 sps:$4 sm:$0xff]   ;;  %v2246_v14 = vld [vmem:[#allocation5 + $0x4b4] ss:$8 sps:$4 sm:$0xff]  }
  0x94   :  { %1537 = vmatpush2.bf16.msra.mxu0 %v2160_v15  ;;  %v2249_v15 = vld [vmem:[#allocation5 + $0x5b4] ss:$8 sps:$4 sm:$0xff]  }
  0x95   :  { %1578 = vmatpush2.bf16.msra.mxu1 %v2163_v18  ;;  %1538 = vmatprep.subr.bf16.mxu0 %v2168_v19  ;;  %v2244_v18 = vld [vmem:[#allocation5 + $0x4b0] ss:$8 sps:$4 sm:$0xff]  }
  0x96   :  { %1579 = vmatprep.subr.bf16.mxu1 %v2171_v20  ;;  %v2247_v19 = vld [vmem:[#allocation5 + $0x5b0] ss:$8 sps:$4 sm:$0xff]   ;;  %v2252_v20 = vld [vmem:[#allocation5 + $0x4a4] ss:$8 sps:$4 sm:$0xff]  }
  0x98   :  { %1539 = vmatpush2.bf16.msra.mxu0 %v2166_v21  ;;  %v2255_v21 = vld [vmem:[#allocation5 + $0x5a4] ss:$8 sps:$4 sm:$0xff]  }
  0x99   :  { %1580 = vmatpush2.bf16.msra.mxu1 %v2169_v22  ;;  %1590 = vmatprep.subr.bf16.mxu0 %v2174_v23  ;;  %v2250_v22 = vld [vmem:[#allocation5 + $0x4a0] ss:$8 sps:$4 sm:$0xff]  }
  0x9a   :  { %1631 = vmatprep.subr.bf16.mxu1 %v2177_v24  ;;  %v2253_v23 = vld [vmem:[#allocation5 + $0x5a0] ss:$8 sps:$4 sm:$0xff]   ;;  %v56_v24 = vcombine.high %v2414_v29, %v2414_v29  ;;  %v2271_v29 = vld [vmem:[#allocation5 + $0x674] ss:$8 sps:$4 sm:$0xff]  }
  0x9b   :  { %1541 = vmatmul.mubr.bf16.vlgmr.msra.gmra.mxu0 %v1745_v25  ;;  %v2258_v25 = vld [vmem:[#allocation5 + $0x494] ss:$8 sps:$4 sm:$0xff]  }
  0x9c   :  { %1582 = vmatmul.mubr.bf16.vlgmr.msra.gmra.mxu1 %v1747_v27  ;;  %1591 = vmatpush1.bf16.msra.mxu0 %v2172_v26  ;;  %v2261_v26 = vld [vmem:[#allocation5 + $0x594] ss:$8 sps:$4 sm:$0xff]   ;;  %v2256_v27 = vld [vmem:[#allocation5 + $0x490] ss:$8 sps:$4 sm:$0xff]  }
  0x9d   :  { %1632 = vmatpush1.bf16.msra.mxu1 %v2175_v28  ;;  %1592 = vmatprep.subr.bf16.mxu0 %v2180_v30  ;;  %v2259_v28 = vld [vmem:[#allocation5 + $0x590] ss:$8 sps:$4 sm:$0xff]   ;;  %v70_v30 = vrot.slane %v56_v24, %v2398_v49 }
  0x9e   :  { %1633 = vmatprep.subr.bf16.mxu1 %v2183_v31  ;;  %1622 = vmatprep.mubr.bf16.mxu0 %v1750_v37  ;;  %v2264_v31 = vld [vmem:[#allocation5 + $0x484] ss:$8 sps:$4 sm:$0xff]   ;;  %v1751_v37 = vcombine.low %v2420_v16, %v2420_v16  ;;  %v2269_v49 = vld [vmem:[#allocation5 + $0x670] ss:$8 sps:$4 sm:$0xff]   ;;  %v2278_v16 = vld [vmem:[#allocation5 + $0x640] ss:$8 sps:$4 sm:$0xff]  }
  0x9f   :  { %1663 = vmatprep.mubr.bf16.mxu1 %v1752_v38 }
  0xa0   :  { %1593 = vmatpush1.bf16.msra.mxu0 %v2178_v17  ;;  %v2262_v17 = vld [vmem:[#allocation5 + $0x480] ss:$8 sps:$4 sm:$0xff]  }
  0xa1   :  { %1634 = vmatpush1.bf16.msra.mxu1 %v2181_v34  ;;  %1594 = vmatprep.subr.bf16.mxu0 %v2186_v35  ;;  %v2265_v34 = vld [vmem:[#allocation5 + $0x580] ss:$8 sps:$4 sm:$0xff]   ;;  %v77_v35 = vunpack.c.l.u8.bf16 %v70_v30 }
  0xa2   :  { %1635 = vmatprep.subr.bf16.mxu1 %v2189_v36  ;;  %v1749_v36 = vcombine.low %v2418_v33, %v2418_v33  ;;  %v2280_v33 = vld [vmem:[#allocation5 + $0x644] ss:$8 sps:$4 sm:$0xff]  }
  0xa3   :  { %v1754_v38 = vcombine.high %v77_v35, %v77_v35 }
  0xa4   :  { %1595 = vmatpush1.bf16.msra.mxu0 %v2184_v39  ;;  %v2274_v39 = vld [vmem:[#allocation5 + $0x664] ss:$8 sps:$4 sm:$0xff]  }
  0xa5   :  { %1636 = vmatpush1.bf16.msra.mxu1 %v2187_v40  ;;  %1596 = vmatprep.subr.bf16.mxu0 %v2192_v41  ;;  %v2272_v40 = vld [vmem:[#allocation5 + $0x660] ss:$8 sps:$4 sm:$0xff]   ;;  %v2277_v41 = vld [vmem:[#allocation5 + $0x654] ss:$8 sps:$4 sm:$0xff]  }
  0xa6   :  { %1637 = vmatprep.subr.bf16.mxu1 %v2195_v42  ;;  %v2275_v42 = vld [vmem:[#allocation5 + $0x650] ss:$8 sps:$4 sm:$0xff]  }
  0xa8   :  { %1597 = vmatpush1.bf16.msra.mxu0 %v2190_v43  ;;  %v2283_v43 = vld [vmem:[#allocation5 + $0x634] ss:$8 sps:$4 sm:$0xff]  }
  0xa9   :  { %1638 = vmatpush1.bf16.msra.mxu1 %v2193_v44  ;;  %1598 = vmatprep.subr.bf16.mxu0 %v2198_v45  ;;  %v2281_v44 = vld [vmem:[#allocation5 + $0x630] ss:$8 sps:$4 sm:$0xff]   ;;  %v2286_v45 = vld [vmem:[#allocation5 + $0x624] ss:$8 sps:$4 sm:$0xff]  }
  0xaa   :  { %1639 = vmatprep.subr.bf16.mxu1 %v2201_v46  ;;  %v2284_v46 = vld [vmem:[#allocation5 + $0x620] ss:$8 sps:$4 sm:$0xff]  }
  0xac   :  { %1599 = vmatpush1.bf16.msra.mxu0 %v2196_v47  ;;  %v2289_v47 = vld [vmem:[#allocation5 + $0x614] ss:$8 sps:$4 sm:$0xff]  }
  0xad   :  { %1640 = vmatpush1.bf16.msra.mxu1 %v2199_v48  ;;  %1600 = vmatprep.subr.bf16.mxu0 %v2204_v50  ;;  %v2287_v48 = vld [vmem:[#allocation5 + $0x610] ss:$8 sps:$4 sm:$0xff]   ;;  %v2292_v50 = vld [vmem:[#allocation5 + $0x604] ss:$8 sps:$4 sm:$0xff]  }
  0xae   :  { %1641 = vmatprep.subr.bf16.mxu1 %v2207_v51  ;;  %v2290_v51 = vld [vmem:[#allocation5 + $0x600] ss:$8 sps:$4 sm:$0xff]  }
  0xb0   :  { %1601 = vmatpush1.bf16.msra.mxu0 %v2202_v52  ;;  %v2295_v52 = vld [vmem:[#allocation5 + $0x6b4] ss:$8 sps:$4 sm:$0xff]  }
  0xb1   :  { %1642 = vmatpush1.bf16.msra.mxu1 %v2205_v53  ;;  %1602 = vmatprep.subr.bf16.mxu0 %v2210_v54  ;;  %v2293_v53 = vld [vmem:[#allocation5 + $0x6b0] ss:$8 sps:$4 sm:$0xff]   ;;  %v2298_v54 = vld [vmem:[#allocation5 + $0x6a4] ss:$8 sps:$4 sm:$0xff]  }
  0xb2   :  { %1643 = vmatprep.subr.bf16.mxu1 %v2213_v55  ;;  %v2296_v55 = vld [vmem:[#allocation5 + $0x6a0] ss:$8 sps:$4 sm:$0xff]  }
  0xb4   :  { %1603 = vmatpush1.bf16.msra.mxu0 %v2208_v56  ;;  %v2301_v56 = vld [vmem:[#allocation5 + $0x694] ss:$8 sps:$4 sm:$0xff]  }
  0xb5   :  { %1644 = vmatpush1.bf16.msra.mxu1 %v2211_v57  ;;  %1604 = vmatprep.subr.bf16.mxu0 %v2216_v58  ;;  %v2299_v57 = vld [vmem:[#allocation5 + $0x690] ss:$8 sps:$4 sm:$0xff]   ;;  %v2304_v58 = vld [vmem:[#allocation5 + $0x684] ss:$8 sps:$4 sm:$0xff]  }
  0xb6   :  { %1645 = vmatprep.subr.bf16.mxu1 %v2219_v59  ;;  %v2302_v59 = vld [vmem:[#allocation5 + $0x680] ss:$8 sps:$4 sm:$0xff]  }
  0xb8   :  { %1605 = vmatpush1.bf16.msra.mxu0 %v2214_v60  ;;  %v1753_v60 = vcombine.low %v77_v35, %v77_v35 }
  0xb9   :  { %1646 = vmatpush1.bf16.msra.mxu1 %v2217_v61  ;;  %1606 = vmatprep.subr.bf16.mxu0 %v2222_v62 }
  0xba   :  { %1647 = vmatprep.subr.bf16.mxu1 %v2225_v63 }
  0xbc   :  { %1607 = vmatpush2.bf16.msra.mxu0 %v2220_v0 }
  0xbd   :  { %1648 = vmatpush2.bf16.msra.mxu1 %v2223_v1  ;;  %1608 = vmatprep.subr.bf16.mxu0 %v2228_v2 }
  0xbe   :  { %1649 = vmatprep.subr.bf16.mxu1 %v2231_v3 }
  0xc0   :  { %1609 = vmatpush2.bf16.msra.mxu0 %v2226_v4 }
  0xc1   :  { %1650 = vmatpush2.bf16.msra.mxu1 %v2229_v5  ;;  %1610 = vmatprep.subr.bf16.mxu0 %v2234_v6 }
  0xc2   :  { %1651 = vmatprep.subr.bf16.mxu1 %v2237_v7 }
  0xc4   :  { %1611 = vmatpush2.bf16.msra.mxu0 %v2232_v8 }
  0xc5   :  { %1652 = vmatpush2.bf16.msra.mxu1 %v2235_v9  ;;  %1612 = vmatprep.subr.bf16.mxu0 %v2240_v10 }
  0xc6   :  { %1653 = vmatprep.subr.bf16.mxu1 %v2243_v11 }
  0xc8   :  { %1613 = vmatpush2.bf16.msra.mxu0 %v2238_v12 }
  0xc9   :  { %1654 = vmatpush2.bf16.msra.mxu1 %v2241_v13  ;;  %1614 = vmatprep.subr.bf16.mxu0 %v2246_v14 }
  0xca   :  { %1655 = vmatprep.subr.bf16.mxu1 %v2249_v15 }
  0xcc   :  { %1615 = vmatpush2.bf16.msra.mxu0 %v2244_v18 }
  0xcd   :  { %1656 = vmatpush2.bf16.msra.mxu1 %v2247_v19  ;;  %1616 = vmatprep.subr.bf16.mxu0 %v2252_v20 }
  0xce   :  { %1657 = vmatprep.subr.bf16.mxu1 %v2255_v21 }
  0xd0   :  { %1617 = vmatpush2.bf16.msra.mxu0 %v2250_v22 }
  0xd1   :  { %1658 = vmatpush2.bf16.msra.mxu1 %v2253_v23  ;;  %1618 = vmatprep.subr.bf16.mxu0 %v2258_v25 }
  0xd2   :  { %1659 = vmatprep.subr.bf16.mxu1 %v2261_v26 }
  0xd4   :  { %1619 = vmatpush2.bf16.msra.mxu0 %v2256_v27 }
  0xd5   :  { %1660 = vmatpush2.bf16.msra.mxu1 %v2259_v28  ;;  %1620 = vmatprep.subr.bf16.mxu0 %v2264_v31 }
  0xd6   :  { %1661 = vmatprep.subr.bf16.mxu1 %v2267_v32 }
  0xd8   :  { %1621 = vmatpush2.bf16.msra.mxu0 %v2262_v17 }
  0xd9   :  { %1662 = vmatpush2.bf16.msra.mxu1 %v2265_v34  ;;  %1672 = vmatprep.subr.bf16.mxu0 %v2271_v29 }
  0xdb   :  { %1623 = vmatmul.mubr.bf16.vlgmr.msra.gmra.mxu0 %v1749_v36 }
  0xdc   :  { %1664 = vmatmul.mubr.bf16.vlgmr.msra.gmra.mxu1 %v1751_v37  ;;  %1673 = vmatpush1.bf16.msra.mxu0 %v2269_v49 }
  0xdd   :  { %1971 = vmatprep.mubr.msk.bf16.mxu0 %vm1422_vm0, %v1754_v38  ;;  %1674 = vmatprep.subr.bf16.mxu0 %v2274_v39 }
  0xe0   :  { %1675 = vmatpush1.bf16.msra.mxu0 %v2272_v40 }
  0xe1   :  { %1676 = vmatprep.subr.bf16.mxu0 %v2277_v41 }
  0xe4   :  { %1677 = vmatpush1.bf16.msra.mxu0 %v2275_v42 }
  0xe5   :  { %1678 = vmatprep.subr.bf16.mxu0 %v2280_v33 }
  0xe8   :  { %1679 = vmatpush1.bf16.msra.mxu0 %v2278_v16 }
  0xe9   :  { %1680 = vmatprep.subr.bf16.mxu0 %v2283_v43 }
  0xec   :  { %1681 = vmatpush1.bf16.msra.mxu0 %v2281_v44 }
  0xed   :  { %1682 = vmatprep.subr.bf16.mxu0 %v2286_v45 }
  0xf0   :  { %1683 = vmatpush1.bf16.msra.mxu0 %v2284_v46 }
  0xf1   :  { %1684 = vmatprep.subr.bf16.mxu0 %v2289_v47 }
  0xf4   :  { %1685 = vmatpush1.bf16.msra.mxu0 %v2287_v48 }
  0xf5   :  { %1686 = vmatprep.subr.bf16.mxu0 %v2292_v50 }
  0xf8   :  { %1687 = vmatpush1.bf16.msra.mxu0 %v2290_v51 }
  0xf9   :  { %1696 = vmatprep.subr.bf16.mxu0 %v2295_v52 }
  0xfc   :  { %1697 = vmatpush2.bf16.msra.mxu0 %v2293_v53 }
  0xfd   :  { %1698 = vmatprep.subr.bf16.mxu0 %v2298_v54 }
 0x100   :  { %1699 = vmatpush2.bf16.msra.mxu0 %v2296_v55 }
 0x101   :  { %1700 = vmatprep.subr.bf16.mxu0 %v2301_v56 }
 0x104   :  { %1701 = vmatpush2.bf16.msra.mxu0 %v2299_v57 }
 0x105   :  { %1702 = vmatprep.subr.bf16.mxu0 %v2304_v58 }
 0x108   :  { %1703 = vmatpush2.bf16.msra.mxu0 %v2302_v59 }
 0x10b   :  { %1705 = vmatmul.mubr.bf16.vlgmr.msra.gmra.mxu0 %v1753_v60 }
 0x11b   :  { %v1460_v61 = vpop.f32.mrf.mxu0 }
 0x11c   :  { %v1501_v62 = vpop.f32.mrf.mxu1 }
 0x11d   :  { %v1502_v63 = vadd.f32 %v1501_v62, %v1460_v61  ;;  %v1462_v0 = vpop.f32.mrf.mxu0 }
 0x11e   :  { %v1503_v1 = vpop.f32.mrf.mxu1 }
 0x11f   :  { %v1504_v2 = vadd.f32 %v1503_v1, %v1462_v0  ;;  %v1464_v3 = vpop.f32.mrf.mxu0 }
 0x120   :  { %v1505_v4 = vpop.f32.mrf.mxu1 }
 0x121   :  { %v1465_v5 = vpop.f32.mrf.mxu0 }
 0x122   :  { %v1506_v6 = vpop.f32.mrf.mxu1 }
 0x15b   :  { %v1542_v7 = vpop.f32.mrf.mxu0 }
 0x15c   :  { %v1583_v8 = vpop.f32.mrf.mxu1  ;;  %v1543_v9 = vadd.f32 %v1542_v7, %v1502_v63 }
 0x15d   :  { %v1544_v10 = vpop.f32.mrf.mxu0 }
 0x15e   :  { %v1585_v11 = vpop.f32.mrf.mxu1  ;;  %v1545_v12 = vadd.f32 %v1544_v10, %v1504_v2  ;;  %v1584_v13 = vadd.f32 %v1583_v8, %v1543_v9 }
 0x15f   :  { %v1546_v14 = vpop.f32.mrf.mxu0 }
 0x160   :  { %v1587_v15 = vpop.f32.mrf.mxu1  ;;  %v1586_v18 = vadd.f32 %v1585_v11, %v1545_v12 }
 0x161   :  { %v1547_v19 = vpop.f32.mrf.mxu0 }
 0x162   :  { %v1588_v20 = vpop.f32.mrf.mxu1 }
 0x19b   :  { %v1624_v21 = vpop.f32.mrf.mxu0 }
 0x19c   :  { %v1665_v22 = vpop.f32.mrf.mxu1  ;;  %v1625_v30 = vadd.f32 %v1624_v21, %v1584_v13 }
 0x19d   :  { %v1626_v23 = vpop.f32.mrf.mxu0 }
 0x19e   :  { %v1667_v24 = vpop.f32.mrf.mxu1  ;;  %v1627_v31 = vadd.f32 %v1626_v23, %v1586_v18  ;;  %v1666_v17 = vadd.f32 %v1665_v22, %v1625_v30 }
 0x19f   :  { %v1628_v25 = vpop.f32.mrf.mxu0 }
 0x1a0   :  { %v1669_v26 = vpop.f32.mrf.mxu1  ;;  %v1668_v34 = vadd.f32 %v1667_v24, %v1627_v31 }
 0x1a1   :  { %v1629_v27 = vpop.f32.mrf.mxu0 }
 0x1a2   :  { %v1670_v28 = vpop.f32.mrf.mxu1 }
 0x1cb   :  { %v1706_v32 = vpop.f32.mrf.mxu0 }
 0x1cc   :  { %v1707_v29 = vadd.f32 %v1706_v32, %v1666_v17 }
 0x1cd   :  { %v1708_v35 = vpop.f32.mrf.mxu0 }
 0x1ce   :  { %v1709_v36 = vadd.f32 %v1708_v35, %v1668_v34 }
 0x1cf   :  { %v1710_v37 = vpop.f32.mrf.mxu0 }
 0x1d0   :  { %v1715_v49 = vcombine.low %v1707_v29, %v1709_v36 }
 0x1d1   :  { %v1711_v38 = vpop.f32.mrf.mxu0 }
 0x1d2   :  { %1972 = vst.sshfl [vmem:[#allocation7] sm:$0x33 pattern:$0x76325410] %v1715_v49 }
 0x1d3   :  { %2356 = shalt.err (!%p2353_p0)
}
 0x1d4   :  { %1734 = dma.vmem_to_hbm [thread:$0]  %s1732_s1, 64, %s2438_s2, [#allocation4]  }
 0x1d5   :  { %2369 = dma.done.wait [#allocation4], 64  }
 0x1d6   :  { %2370 = vsyncadd [#allocation4], 4294967232 }
 0x1d7   :  { %1738 = vsyncpa [#allocation3], 1 }
 0x1d8   :  { %1739 = vsyncpa [#allocation6], 1 }
 0x1d9   :  { %1740 = vsyncpa [#allocation4], 1 }

</bundles_post_ra>
